<compile_context>
chip_gen: v7x
topology: tpu7x:2x2x1
jax: 0.10.0
libtpu: 0.0.40
codegen_flags: <defaults>
</compile_context>

<pallas_src>
import jax
import jax.numpy as jnp
import numpy as np
from jax.experimental import pallas as pl
from jax.experimental.pallas import tpu as pltpu


# ------------------------------------------------------------------ kernel ---
def _lenet_fused_kernel(x_ref, a1_ref, b1_ref, a2_ref, b2_ref, v_ref,
                        bf1_ref, wf2_ref, bf2_ref, wo_ref, bo_ref, o_ref):
    tb = x_ref.shape[1]
    x = x_ref[...]                                     # (28, tb, 28)  rows=(h, n)

    # ---- conv1 (1->6, k=5) + bias + ReLU : 5 shifted matmuls ----------------
    acc = None
    for di in range(5):
        lhs = x[di:di + 24].reshape(24 * tb, 28)       # rows=(out_row, n)
        p = jnp.dot(lhs, a1_ref[di], preferred_element_type=jnp.float32)
        acc = p if acc is None else acc + p
    r1 = jnp.maximum(acc + b1_ref[...], 0.0)           # (24*tb, 144) cols=(par, j', d)

    # ---- 2x2 max-pool #1 ----------------------------------------------------
    p1 = jnp.maximum(r1[:, :72], r1[:, 72:])           # pool over W -> (24*tb, 72)
    p1 = p1.reshape(24, tb, 72)
    h1 = jnp.concatenate(
        [jnp.maximum(p1[2 * i], p1[2 * i + 1]) for i in range(12)], axis=0)
                                                       # pool over H -> (12*tb, 72)

    # ---- conv2 (6->12, k=5) + bias + ReLU : 5 shifted matmuls ---------------
    acc = None
    for di in range(5):
        lhs = h1[di * tb:(di + 8) * tb, :]             # (8*tb, 72)
        p = jnp.dot(lhs, a2_ref[di], preferred_element_type=jnp.float32)
        acc = p if acc is None else acc + p
    r2 = jnp.maximum(acc + b2_ref[...], 0.0)           # (8*tb, 96)

    # ---- 2x2 max-pool #2 (W here, H fused into the fc1 contraction) ---------
    q = jnp.maximum(r2[:, :48], r2[:, 48:])            # (8*tb, 48)
    q = q.reshape(8, tb, 48)

    # ---- flatten (folded into fc1 weights) + fc1 + ReLU ---------------------
    acc = None
    for i3 in range(4):
        t = jnp.maximum(q[2 * i3], q[2 * i3 + 1])      # pool over H -> (tb, 48)
        p = jnp.dot(t, v_ref[i3], preferred_element_type=jnp.float32)
        acc = p if acc is None else acc + p
    h = jnp.maximum(acc + bf1_ref[...], 0.0)           # (tb, 128)  [120 real + pad]

    # ---- fc2 + ReLU, out -----------------------------------------------------
    h = jnp.maximum(jnp.dot(h, wf2_ref[...], preferred_element_type=jnp.float32)
                    + bf2_ref[...], 0.0)               # (tb, 128)  [60 real + pad]
    o_ref[...] = (jnp.dot(h, wo_ref[...], preferred_element_type=jnp.float32)
                  + bo_ref[...])                       # (tb, 10)


# --------------------------------------------------------- parameter prep ----
def prepare_params(p):
    """One-time (outside jit) conversion of PyTorch-layout params into
    matmul-ready banded / permuted / 128-padded matrices for the fused kernel."""
    w1 = np.asarray(p["conv1_w"], np.float32)    # (6,1,5,5)
    b1 = np.asarray(p["conv1_b"], np.float32)
    w2 = np.asarray(p["conv2_w"], np.float32)    # (12,6,5,5)
    b2 = np.asarray(p["conv2_b"], np.float32)
    wf1 = np.asarray(p["fc1_w"], np.float32)     # (120,192)
    bf1 = np.asarray(p["fc1_b"], np.float32)
    wf2 = np.asarray(p["fc2_w"], np.float32)     # (60,120)
    bf2 = np.asarray(p["fc2_b"], np.float32)
    wo = np.asarray(p["out_w"], np.float32)      # (10,60)
    bo = np.asarray(p["out_b"], np.float32)

    # conv1 banded matrices A1[di, w, col] with col = (j%2)*72 + (j//2)*6 + d
    A1 = np.zeros((5, 28, 144), np.float32)
    for j in range(24):
        c0 = (j % 2) * 72 + (j // 2) * 6
        for dj in range(5):
            A1[:, j + dj, c0:c0 + 6] = w1[:, 0, :, dj].T          # (di, d)
    b1row = np.tile(b1, 24)[None, :]                              # (1,144)

    # conv2 banded matrices A2[di, j'*6+c, col] with col = (j2%2)*48 + (j2//2)*12 + e
    A2 = np.zeros((5, 72, 96), np.float32)
    for j2 in range(8):
        c0 = (j2 % 2) * 48 + (j2 // 2) * 12
        for dj in range(5):
            A2[:, (j2 + dj) * 6:(j2 + dj) * 6 + 6, c0:c0 + 12] = \
                np.transpose(w2[:, :, :, dj], (2, 1, 0))          # (di, c, e)
    b2row = np.tile(b2, 8)[None, :]                               # (1,96)

    # fc1 split per pooled row i3 (fuses pool2-H + NCHW flatten), padded 120->128
    V = np.zeros((4, 48, 128), np.float32)
    for i3 in range(4):
        for j3 in range(4):
            for e in range(12):
                V[i3, j3 * 12 + e, :120] = wf1[:, e * 16 + i3 * 4 + j3]
    bf1p = np.zeros((1, 128), np.float32)
    bf1p[0, :120] = bf1

    Wf2p = np.zeros((128, 128), np.float32)
    Wf2p[:120, :60] = wf2.T
    bf2p = np.zeros((1, 128), np.float32)
    bf2p[0, :60] = bf2

    Wop = np.zeros((128, 10), np.float32)
    Wop[:60, :] = wo.T
    borow = bo[None, :].astype(np.float32)                        # (1,10)

    arrs = (A1, b1row, A2, b2row, V, bf1p, Wf2p, bf2p, Wop, borow)
    return tuple(jnp.asarray(a) for a in arrs)


# ----------------------------------------------------------------- forward ---
def network_forward(x_nchw, prep, tb=8):
    N = x_nchw.shape[0]
    assert x_nchw.shape[1:] == (1, 28, 28), x_nchw.shape
    assert tb % 8 == 0 and N % tb == 0, (N, tb)

    # (N,1,28,28) -> (28, N, 28): image-row major, batch minor.  Only XLA-side
    # layout glue left; everything else runs inside the single fused kernel.
    x = jnp.transpose(x_nchw.reshape(N, 28, 28).astype(jnp.float32), (1, 0, 2))

    def _resident(a):   # full-array block, same index every step -> fetched once
        return pl.BlockSpec(a.shape, lambda i: (0,) * a.ndim)

    weights = prep
    flops = N * (2 * 24 * 24 * 25 * 6 + 2 * 8 * 8 * 25 * 6 * 12
                 + 2 * (192 * 120 + 120 * 60 + 60 * 10))
    bytes_accessed = 4 * (int(x.size) + N * 10 + sum(int(w.size) for w in weights))

    return pl.pallas_call(
        _lenet_fused_kernel,
        out_shape=jax.ShapeDtypeStruct((N, 10), jnp.float32),
        grid_spec=pltpu.PrefetchScalarGridSpec(
            num_scalar_prefetch=0,
            grid=(N // tb,),
            in_specs=[pl.BlockSpec((28, tb, 28), lambda i: (0, i, 0))]
                     + [_resident(w) for w in weights],
            out_specs=pl.BlockSpec((tb, 10), lambda i: (i, 0)),
        ),
        compiler_params=pltpu.CompilerParams(
            dimension_semantics=("parallel",),
            vmem_limit_bytes=32 * 1024 * 1024,
        ),
        cost_estimate=pl.CostEstimate(flops=flops, transcendentals=0,
                                      bytes_accessed=bytes_accessed),
    )(x, *weights)


# ----------------------------------------------------------------- helpers ---
def init_params(key):
    """PyTorch-default-style uniform(-1/sqrt(fan_in), 1/sqrt(fan_in)) init."""
    ks = jax.random.split(key, 10)

    def u(k, shape, fan_in):
        bound = 1.0 / np.sqrt(np.float32(fan_in))
        return jax.random.uniform(k, shape, jnp.float32, -bound, bound)

    return {
        "conv1_w": u(ks[0], (6, 1, 5, 5), 25), "conv1_b": u(ks[1], (6,), 25),
        "conv2_w": u(ks[2], (12, 6, 5, 5), 150), "conv2_b": u(ks[3], (12,), 150),
        "fc1_w": u(ks[4], (120, 192), 192), "fc1_b": u(ks[5], (120,), 192),
        "fc2_w": u(ks[6], (60, 120), 120), "fc2_b": u(ks[7], (60,), 120),
        "out_w": u(ks[8], (10, 60), 60), "out_b": u(ks[9], (10,), 60),
    }


def reference_forward(x_nchw, p):
    hi = jax.lax.Precision.HIGHEST
    t = jax.lax.conv_general_dilated(x_nchw, p["conv1_w"], (1, 1), "VALID",
                                     dimension_numbers=("NCHW", "OIHW", "NCHW"),
                                     precision=hi)
    t = jax.nn.relu(t + p["conv1_b"][None, :, None, None])
    t = jax.lax.reduce_window(t, -jnp.inf, jax.lax.max, (1, 1, 2, 2), (1, 1, 2, 2), "VALID")
    t = jax.lax.conv_general_dilated(t, p["conv2_w"], (1, 1), "VALID",
                                     dimension_numbers=("NCHW", "OIHW", "NCHW"),
                                     precision=hi)
    t = jax.nn.relu(t + p["conv2_b"][None, :, None, None])
    t = jax.lax.reduce_window(t, -jnp.inf, jax.lax.max, (1, 1, 2, 2), (1, 1, 2, 2), "VALID")
    t = t.reshape(t.shape[0], 12 * 4 * 4)
    t = jax.nn.relu(jnp.dot(t, p["fc1_w"].T, precision=hi) + p["fc1_b"])
    t = jax.nn.relu(jnp.dot(t, p["fc2_w"].T, precision=hi) + p["fc2_b"])
    return jnp.dot(t, p["out_w"].T, precision=hi) + p["out_b"]


if __name__ == "__main__":
    key = jax.random.PRNGKey(0)
    kx, kp = jax.random.split(key)
    x = jax.random.normal(kx, (16, 1, 28, 28), jnp.float32)   # NCHW like PyTorch
    params = init_params(kp)
    prep = prepare_params(params)          # one-time weight prep, outside the jit

    fwd = jax.jit(network_forward)
    y = fwd(x, prep)
    jax.block_until_ready(y)
    assert y.shape == (16, 10) and y.dtype == jnp.float32

    y_ref = reference_forward(x, params)
    assert jnp.allclose(y, y_ref, rtol=5e-2, atol=5e-2), \
        float(jnp.max(jnp.abs(y - y_ref)))
    print("KERNEL_OK")
</pallas_src>

<mosaic_0001>
module attributes {stable_mosaic.version = 11 : i64} {
  func.func @_lenet_fused_kernel(%arg0: i32, %arg1: memref<28x8x28xf32, #tpu.memory_space<vmem>>, %arg2: memref<5x28x144xf32, #tpu.memory_space<vmem>>, %arg3: memref<1x144xf32, #tpu.memory_space<vmem>>, %arg4: memref<5x72x96xf32, #tpu.memory_space<vmem>>, %arg5: memref<1x96xf32, #tpu.memory_space<vmem>>, %arg6: memref<4x48x128xf32, #tpu.memory_space<vmem>>, %arg7: memref<1x128xf32, #tpu.memory_space<vmem>>, %arg8: memref<128x128xf32, #tpu.memory_space<vmem>>, %arg9: memref<1x128xf32, #tpu.memory_space<vmem>>, %arg10: memref<128x10xf32, #tpu.memory_space<vmem>>, %arg11: memref<1x10xf32, #tpu.memory_space<vmem>>, %arg12: memref<8x10xf32, #tpu.memory_space<vmem>>) attributes {dimension_semantics = [#tpu.dimension_semantics<parallel>], iteration_bounds = array<i64: 2>, scalar_prefetch = 0 : i64, scratch_operands = 0 : i64, tpu.core_type = #tpu.core_type<tc>, window_params = [{transform_indices = @transform_0, window_bounds = array<i64: 28, 8, 28>}, {pipeline_mode = #tpu.pipeline_mode<synchronous>, transform_indices = @transform_1, window_bounds = array<i64: 5, 28, 144>}, {pipeline_mode = #tpu.pipeline_mode<synchronous>, transform_indices = @transform_2, window_bounds = array<i64: 1, 144>}, {pipeline_mode = #tpu.pipeline_mode<synchronous>, transform_indices = @transform_3, window_bounds = array<i64: 5, 72, 96>}, {pipeline_mode = #tpu.pipeline_mode<synchronous>, transform_indices = @transform_4, window_bounds = array<i64: 1, 96>}, {pipeline_mode = #tpu.pipeline_mode<synchronous>, transform_indices = @transform_5, window_bounds = array<i64: 4, 48, 128>}, {pipeline_mode = #tpu.pipeline_mode<synchronous>, transform_indices = @transform_6, window_bounds = array<i64: 1, 128>}, {pipeline_mode = #tpu.pipeline_mode<synchronous>, transform_indices = @transform_7, window_bounds = array<i64: 128, 128>}, {pipeline_mode = #tpu.pipeline_mode<synchronous>, transform_indices = @transform_8, window_bounds = array<i64: 1, 128>}, {pipeline_mode = #tpu.pipeline_mode<synchronous>, transform_indices = @transform_9, window_bounds = array<i64: 128, 10>}, {pipeline_mode = #tpu.pipeline_mode<synchronous>, transform_indices = @transform_10, window_bounds = array<i64: 1, 10>}, {transform_indices = @transform_11, window_bounds = array<i64: 8, 10>}]} {
    %c0 = arith.constant 0 : index
    %c0_0 = arith.constant 0 : index
    %c0_1 = arith.constant 0 : index
    %0 = vector.load %arg1[%c0, %c0_0, %c0_1] : memref<28x8x28xf32, #tpu.memory_space<vmem>>, vector<28x8x28xf32>
    %1 = vector.extract_strided_slice %0 {offsets = [0, 0, 0], sizes = [24, 8, 28], strides = [1, 1, 1]} : vector<28x8x28xf32> to vector<24x8x28xf32>
    %2 = vector.shape_cast %1 : vector<24x8x28xf32> to vector<192x28xf32>
    %c0_2 = arith.constant 0 : index
    %c0_3 = arith.constant 0 : index
    %c0_4 = arith.constant 0 : index
    %3 = vector.load %arg2[%c0_2, %c0_3, %c0_4] : memref<5x28x144xf32, #tpu.memory_space<vmem>>, vector<1x28x144xf32>
    %4 = vector.shape_cast %3 : vector<1x28x144xf32> to vector<28x144xf32>
    %cst = arith.constant dense<0.000000e+00> : vector<192x144xf32>
    %5 = tpu.matmul %2, %4, %cst {dimension_numbers = #tpu.dot_dimension_numbers<[1], [0], [0], [1], [0, 0, 1, 1], [], []>} : vector<192x28xf32>, vector<28x144xf32>, vector<192x144xf32> -> vector<192x144xf32>
    %6 = vector.extract_strided_slice %0 {offsets = [1, 0, 0], sizes = [24, 8, 28], strides = [1, 1, 1]} : vector<28x8x28xf32> to vector<24x8x28xf32>
    %7 = vector.shape_cast %6 : vector<24x8x28xf32> to vector<192x28xf32>
    %c1 = arith.constant 1 : index
    %c0_5 = arith.constant 0 : index
    %c0_6 = arith.constant 0 : index
    %8 = vector.load %arg2[%c1, %c0_5, %c0_6] : memref<5x28x144xf32, #tpu.memory_space<vmem>>, vector<1x28x144xf32>
    %9 = vector.shape_cast %8 : vector<1x28x144xf32> to vector<28x144xf32>
    %cst_7 = arith.constant dense<0.000000e+00> : vector<192x144xf32>
    %10 = tpu.matmul %7, %9, %cst_7 {dimension_numbers = #tpu.dot_dimension_numbers<[1], [0], [0], [1], [0, 0, 1, 1], [], []>} : vector<192x28xf32>, vector<28x144xf32>, vector<192x144xf32> -> vector<192x144xf32>
    %11 = arith.addf %5, %10 : vector<192x144xf32>
    %12 = vector.extract_strided_slice %0 {offsets = [2, 0, 0], sizes = [24, 8, 28], strides = [1, 1, 1]} : vector<28x8x28xf32> to vector<24x8x28xf32>
    %13 = vector.shape_cast %12 : vector<24x8x28xf32> to vector<192x28xf32>
    %c2 = arith.constant 2 : index
    %c0_8 = arith.constant 0 : index
    %c0_9 = arith.constant 0 : index
    %14 = vector.load %arg2[%c2, %c0_8, %c0_9] : memref<5x28x144xf32, #tpu.memory_space<vmem>>, vector<1x28x144xf32>
    %15 = vector.shape_cast %14 : vector<1x28x144xf32> to vector<28x144xf32>
    %cst_10 = arith.constant dense<0.000000e+00> : vector<192x144xf32>
    %16 = tpu.matmul %13, %15, %cst_10 {dimension_numbers = #tpu.dot_dimension_numbers<[1], [0], [0], [1], [0, 0, 1, 1], [], []>} : vector<192x28xf32>, vector<28x144xf32>, vector<192x144xf32> -> vector<192x144xf32>
    %17 = arith.addf %11, %16 : vector<192x144xf32>
    %18 = vector.extract_strided_slice %0 {offsets = [3, 0, 0], sizes = [24, 8, 28], strides = [1, 1, 1]} : vector<28x8x28xf32> to vector<24x8x28xf32>
    %19 = vector.shape_cast %18 : vector<24x8x28xf32> to vector<192x28xf32>
    %c3 = arith.constant 3 : index
    %c0_11 = arith.constant 0 : index
    %c0_12 = arith.constant 0 : index
    %20 = vector.load %arg2[%c3, %c0_11, %c0_12] : memref<5x28x144xf32, #tpu.memory_space<vmem>>, vector<1x28x144xf32>
    %21 = vector.shape_cast %20 : vector<1x28x144xf32> to vector<28x144xf32>
    %cst_13 = arith.constant dense<0.000000e+00> : vector<192x144xf32>
    %22 = tpu.matmul %19, %21, %cst_13 {dimension_numbers = #tpu.dot_dimension_numbers<[1], [0], [0], [1], [0, 0, 1, 1], [], []>} : vector<192x28xf32>, vector<28x144xf32>, vector<192x144xf32> -> vector<192x144xf32>
    %23 = arith.addf %17, %22 : vector<192x144xf32>
    %24 = vector.extract_strided_slice %0 {offsets = [4, 0, 0], sizes = [24, 8, 28], strides = [1, 1, 1]} : vector<28x8x28xf32> to vector<24x8x28xf32>
    %25 = vector.shape_cast %24 : vector<24x8x28xf32> to vector<192x28xf32>
    %c4 = arith.constant 4 : index
    %c0_14 = arith.constant 0 : index
    %c0_15 = arith.constant 0 : index
    %26 = vector.load %arg2[%c4, %c0_14, %c0_15] : memref<5x28x144xf32, #tpu.memory_space<vmem>>, vector<1x28x144xf32>
    %27 = vector.shape_cast %26 : vector<1x28x144xf32> to vector<28x144xf32>
    %cst_16 = arith.constant dense<0.000000e+00> : vector<192x144xf32>
    %28 = tpu.matmul %25, %27, %cst_16 {dimension_numbers = #tpu.dot_dimension_numbers<[1], [0], [0], [1], [0, 0, 1, 1], [], []>} : vector<192x28xf32>, vector<28x144xf32>, vector<192x144xf32> -> vector<192x144xf32>
    %29 = arith.addf %23, %28 : vector<192x144xf32>
    %c0_17 = arith.constant 0 : index
    %c0_18 = arith.constant 0 : index
    %30 = vector.load %arg3[%c0_17, %c0_18] : memref<1x144xf32, #tpu.memory_space<vmem>>, vector<1x144xf32>
    %31 = vector.broadcast %30 : vector<1x144xf32> to vector<192x144xf32>
    %32 = arith.addf %29, %31 : vector<192x144xf32>
    %cst_19 = arith.constant 0.000000e+00 : f32
    %33 = vector.broadcast %cst_19 : f32 to vector<192x144xf32>
    %34 = arith.maximumf %32, %33 : vector<192x144xf32>
    %35 = vector.extract_strided_slice %34 {offsets = [0, 0], sizes = [192, 72], strides = [1, 1]} : vector<192x144xf32> to vector<192x72xf32>
    %36 = vector.extract_strided_slice %34 {offsets = [0, 72], sizes = [192, 72], strides = [1, 1]} : vector<192x144xf32> to vector<192x72xf32>
    %37 = arith.maximumf %35, %36 : vector<192x72xf32>
    %38 = vector.shape_cast %37 : vector<192x72xf32> to vector<24x8x72xf32>
    %39 = vector.extract_strided_slice %38 {offsets = [0, 0, 0], sizes = [1, 8, 72], strides = [1, 1, 1]} : vector<24x8x72xf32> to vector<1x8x72xf32>
    %40 = vector.shape_cast %39 : vector<1x8x72xf32> to vector<8x72xf32>
    %41 = vector.extract_strided_slice %38 {offsets = [1, 0, 0], sizes = [1, 8, 72], strides = [1, 1, 1]} : vector<24x8x72xf32> to vector<1x8x72xf32>
    %42 = vector.shape_cast %41 : vector<1x8x72xf32> to vector<8x72xf32>
    %43 = arith.maximumf %40, %42 : vector<8x72xf32>
    %44 = vector.extract_strided_slice %38 {offsets = [2, 0, 0], sizes = [1, 8, 72], strides = [1, 1, 1]} : vector<24x8x72xf32> to vector<1x8x72xf32>
    %45 = vector.shape_cast %44 : vector<1x8x72xf32> to vector<8x72xf32>
    %46 = vector.extract_strided_slice %38 {offsets = [3, 0, 0], sizes = [1, 8, 72], strides = [1, 1, 1]} : vector<24x8x72xf32> to vector<1x8x72xf32>
    %47 = vector.shape_cast %46 : vector<1x8x72xf32> to vector<8x72xf32>
    %48 = arith.maximumf %45, %47 : vector<8x72xf32>
    %49 = vector.extract_strided_slice %38 {offsets = [4, 0, 0], sizes = [1, 8, 72], strides = [1, 1, 1]} : vector<24x8x72xf32> to vector<1x8x72xf32>
    %50 = vector.shape_cast %49 : vector<1x8x72xf32> to vector<8x72xf32>
    %51 = vector.extract_strided_slice %38 {offsets = [5, 0, 0], sizes = [1, 8, 72], strides = [1, 1, 1]} : vector<24x8x72xf32> to vector<1x8x72xf32>
    %52 = vector.shape_cast %51 : vector<1x8x72xf32> to vector<8x72xf32>
    %53 = arith.maximumf %50, %52 : vector<8x72xf32>
    %54 = vector.extract_strided_slice %38 {offsets = [6, 0, 0], sizes = [1, 8, 72], strides = [1, 1, 1]} : vector<24x8x72xf32> to vector<1x8x72xf32>
    %55 = vector.shape_cast %54 : vector<1x8x72xf32> to vector<8x72xf32>
    %56 = vector.extract_strided_slice %38 {offsets = [7, 0, 0], sizes = [1, 8, 72], strides = [1, 1, 1]} : vector<24x8x72xf32> to vector<1x8x72xf32>
    %57 = vector.shape_cast %56 : vector<1x8x72xf32> to vector<8x72xf32>
    %58 = arith.maximumf %55, %57 : vector<8x72xf32>
    %59 = vector.extract_strided_slice %38 {offsets = [8, 0, 0], sizes = [1, 8, 72], strides = [1, 1, 1]} : vector<24x8x72xf32> to vector<1x8x72xf32>
    %60 = vector.shape_cast %59 : vector<1x8x72xf32> to vector<8x72xf32>
    %61 = vector.extract_strided_slice %38 {offsets = [9, 0, 0], sizes = [1, 8, 72], strides = [1, 1, 1]} : vector<24x8x72xf32> to vector<1x8x72xf32>
    %62 = vector.shape_cast %61 : vector<1x8x72xf32> to vector<8x72xf32>
    %63 = arith.maximumf %60, %62 : vector<8x72xf32>
    %64 = vector.extract_strided_slice %38 {offsets = [10, 0, 0], sizes = [1, 8, 72], strides = [1, 1, 1]} : vector<24x8x72xf32> to vector<1x8x72xf32>
    %65 = vector.shape_cast %64 : vector<1x8x72xf32> to vector<8x72xf32>
    %66 = vector.extract_strided_slice %38 {offsets = [11, 0, 0], sizes = [1, 8, 72], strides = [1, 1, 1]} : vector<24x8x72xf32> to vector<1x8x72xf32>
    %67 = vector.shape_cast %66 : vector<1x8x72xf32> to vector<8x72xf32>
    %68 = arith.maximumf %65, %67 : vector<8x72xf32>
    %69 = vector.extract_strided_slice %38 {offsets = [12, 0, 0], sizes = [1, 8, 72], strides = [1, 1, 1]} : vector<24x8x72xf32> to vector<1x8x72xf32>
    %70 = vector.shape_cast %69 : vector<1x8x72xf32> to vector<8x72xf32>
    %71 = vector.extract_strided_slice %38 {offsets = [13, 0, 0], sizes = [1, 8, 72], strides = [1, 1, 1]} : vector<24x8x72xf32> to vector<1x8x72xf32>
    %72 = vector.shape_cast %71 : vector<1x8x72xf32> to vector<8x72xf32>
    %73 = arith.maximumf %70, %72 : vector<8x72xf32>
    %74 = vector.extract_strided_slice %38 {offsets = [14, 0, 0], sizes = [1, 8, 72], strides = [1, 1, 1]} : vector<24x8x72xf32> to vector<1x8x72xf32>
    %75 = vector.shape_cast %74 : vector<1x8x72xf32> to vector<8x72xf32>
    %76 = vector.extract_strided_slice %38 {offsets = [15, 0, 0], sizes = [1, 8, 72], strides = [1, 1, 1]} : vector<24x8x72xf32> to vector<1x8x72xf32>
    %77 = vector.shape_cast %76 : vector<1x8x72xf32> to vector<8x72xf32>
    %78 = arith.maximumf %75, %77 : vector<8x72xf32>
    %79 = vector.extract_strided_slice %38 {offsets = [16, 0, 0], sizes = [1, 8, 72], strides = [1, 1, 1]} : vector<24x8x72xf32> to vector<1x8x72xf32>
    %80 = vector.shape_cast %79 : vector<1x8x72xf32> to vector<8x72xf32>
    %81 = vector.extract_strided_slice %38 {offsets = [17, 0, 0], sizes = [1, 8, 72], strides = [1, 1, 1]} : vector<24x8x72xf32> to vector<1x8x72xf32>
    %82 = vector.shape_cast %81 : vector<1x8x72xf32> to vector<8x72xf32>
    %83 = arith.maximumf %80, %82 : vector<8x72xf32>
    %84 = vector.extract_strided_slice %38 {offsets = [18, 0, 0], sizes = [1, 8, 72], strides = [1, 1, 1]} : vector<24x8x72xf32> to vector<1x8x72xf32>
    %85 = vector.shape_cast %84 : vector<1x8x72xf32> to vector<8x72xf32>
    %86 = vector.extract_strided_slice %38 {offsets = [19, 0, 0], sizes = [1, 8, 72], strides = [1, 1, 1]} : vector<24x8x72xf32> to vector<1x8x72xf32>
    %87 = vector.shape_cast %86 : vector<1x8x72xf32> to vector<8x72xf32>
    %88 = arith.maximumf %85, %87 : vector<8x72xf32>
    %89 = vector.extract_strided_slice %38 {offsets = [20, 0, 0], sizes = [1, 8, 72], strides = [1, 1, 1]} : vector<24x8x72xf32> to vector<1x8x72xf32>
    %90 = vector.shape_cast %89 : vector<1x8x72xf32> to vector<8x72xf32>
    %91 = vector.extract_strided_slice %38 {offsets = [21, 0, 0], sizes = [1, 8, 72], strides = [1, 1, 1]} : vector<24x8x72xf32> to vector<1x8x72xf32>
    %92 = vector.shape_cast %91 : vector<1x8x72xf32> to vector<8x72xf32>
    %93 = arith.maximumf %90, %92 : vector<8x72xf32>
    %94 = vector.extract_strided_slice %38 {offsets = [22, 0, 0], sizes = [1, 8, 72], strides = [1, 1, 1]} : vector<24x8x72xf32> to vector<1x8x72xf32>
    %95 = vector.shape_cast %94 : vector<1x8x72xf32> to vector<8x72xf32>
    %96 = vector.extract_strided_slice %38 {offsets = [23, 0, 0], sizes = [1, 8, 72], strides = [1, 1, 1]} : vector<24x8x72xf32> to vector<1x8x72xf32>
    %97 = vector.shape_cast %96 : vector<1x8x72xf32> to vector<8x72xf32>
    %98 = arith.maximumf %95, %97 : vector<8x72xf32>
    %99 = tpu.concatenate %43, %48, %53, %58, %63, %68, %73, %78, %83, %88, %93, %98 in 0 : vector<8x72xf32>, vector<8x72xf32>, vector<8x72xf32>, vector<8x72xf32>, vector<8x72xf32>, vector<8x72xf32>, vector<8x72xf32>, vector<8x72xf32>, vector<8x72xf32>, vector<8x72xf32>, vector<8x72xf32>, vector<8x72xf32> -> vector<96x72xf32>
    %100 = vector.extract_strided_slice %99 {offsets = [0, 0], sizes = [64, 72], strides = [1, 1]} : vector<96x72xf32> to vector<64x72xf32>
    %c0_20 = arith.constant 0 : index
    %c0_21 = arith.constant 0 : index
    %c0_22 = arith.constant 0 : index
    %101 = vector.load %arg4[%c0_20, %c0_21, %c0_22] : memref<5x72x96xf32, #tpu.memory_space<vmem>>, vector<1x72x96xf32>
    %102 = vector.shape_cast %101 : vector<1x72x96xf32> to vector<72x96xf32>
    %cst_23 = arith.constant dense<0.000000e+00> : vector<64x96xf32>
    %103 = tpu.matmul %100, %102, %cst_23 {dimension_numbers = #tpu.dot_dimension_numbers<[1], [0], [0], [1], [0, 0, 1, 1], [], []>} : vector<64x72xf32>, vector<72x96xf32>, vector<64x96xf32> -> vector<64x96xf32>
    %104 = vector.extract_strided_slice %99 {offsets = [8, 0], sizes = [64, 72], strides = [1, 1]} : vector<96x72xf32> to vector<64x72xf32>
    %c1_24 = arith.constant 1 : index
    %c0_25 = arith.constant 0 : index
    %c0_26 = arith.constant 0 : index
    %105 = vector.load %arg4[%c1_24, %c0_25, %c0_26] : memref<5x72x96xf32, #tpu.memory_space<vmem>>, vector<1x72x96xf32>
    %106 = vector.shape_cast %105 : vector<1x72x96xf32> to vector<72x96xf32>
    %cst_27 = arith.constant dense<0.000000e+00> : vector<64x96xf32>
    %107 = tpu.matmul %104, %106, %cst_27 {dimension_numbers = #tpu.dot_dimension_numbers<[1], [0], [0], [1], [0, 0, 1, 1], [], []>} : vector<64x72xf32>, vector<72x96xf32>, vector<64x96xf32> -> vector<64x96xf32>
    %108 = arith.addf %103, %107 : vector<64x96xf32>
    %109 = vector.extract_strided_slice %99 {offsets = [16, 0], sizes = [64, 72], strides = [1, 1]} : vector<96x72xf32> to vector<64x72xf32>
    %c2_28 = arith.constant 2 : index
    %c0_29 = arith.constant 0 : index
    %c0_30 = arith.constant 0 : index
    %110 = vector.load %arg4[%c2_28, %c0_29, %c0_30] : memref<5x72x96xf32, #tpu.memory_space<vmem>>, vector<1x72x96xf32>
    %111 = vector.shape_cast %110 : vector<1x72x96xf32> to vector<72x96xf32>
    %cst_31 = arith.constant dense<0.000000e+00> : vector<64x96xf32>
    %112 = tpu.matmul %109, %111, %cst_31 {dimension_numbers = #tpu.dot_dimension_numbers<[1], [0], [0], [1], [0, 0, 1, 1], [], []>} : vector<64x72xf32>, vector<72x96xf32>, vector<64x96xf32> -> vector<64x96xf32>
    %113 = arith.addf %108, %112 : vector<64x96xf32>
    %114 = vector.extract_strided_slice %99 {offsets = [24, 0], sizes = [64, 72], strides = [1, 1]} : vector<96x72xf32> to vector<64x72xf32>
    %c3_32 = arith.constant 3 : index
    %c0_33 = arith.constant 0 : index
    %c0_34 = arith.constant 0 : index
    %115 = vector.load %arg4[%c3_32, %c0_33, %c0_34] : memref<5x72x96xf32, #tpu.memory_space<vmem>>, vector<1x72x96xf32>
    %116 = vector.shape_cast %115 : vector<1x72x96xf32> to vector<72x96xf32>
    %cst_35 = arith.constant dense<0.000000e+00> : vector<64x96xf32>
    %117 = tpu.matmul %114, %116, %cst_35 {dimension_numbers = #tpu.dot_dimension_numbers<[1], [0], [0], [1], [0, 0, 1, 1], [], []>} : vector<64x72xf32>, vector<72x96xf32>, vector<64x96xf32> -> vector<64x96xf32>
    %118 = arith.addf %113, %117 : vector<64x96xf32>
    %119 = vector.extract_strided_slice %99 {offsets = [32, 0], sizes = [64, 72], strides = [1, 1]} : vector<96x72xf32> to vector<64x72xf32>
    %c4_36 = arith.constant 4 : index
    %c0_37 = arith.constant 0 : index
    %c0_38 = arith.constant 0 : index
    %120 = vector.load %arg4[%c4_36, %c0_37, %c0_38] : memref<5x72x96xf32, #tpu.memory_space<vmem>>, vector<1x72x96xf32>
    %121 = vector.shape_cast %120 : vector<1x72x96xf32> to vector<72x96xf32>
    %cst_39 = arith.constant dense<0.000000e+00> : vector<64x96xf32>
    %122 = tpu.matmul %119, %121, %cst_39 {dimension_numbers = #tpu.dot_dimension_numbers<[1], [0], [0], [1], [0, 0, 1, 1], [], []>} : vector<64x72xf32>, vector<72x96xf32>, vector<64x96xf32> -> vector<64x96xf32>
    %123 = arith.addf %118, %122 : vector<64x96xf32>
    %c0_40 = arith.constant 0 : index
    %c0_41 = arith.constant 0 : index
    %124 = vector.load %arg5[%c0_40, %c0_41] : memref<1x96xf32, #tpu.memory_space<vmem>>, vector<1x96xf32>
    %125 = vector.broadcast %124 : vector<1x96xf32> to vector<64x96xf32>
    %126 = arith.addf %123, %125 : vector<64x96xf32>
    %cst_42 = arith.constant 0.000000e+00 : f32
    %127 = vector.broadcast %cst_42 : f32 to vector<64x96xf32>
    %128 = arith.maximumf %126, %127 : vector<64x96xf32>
    %129 = vector.extract_strided_slice %128 {offsets = [0, 0], sizes = [64, 48], strides = [1, 1]} : vector<64x96xf32> to vector<64x48xf32>
    %130 = vector.extract_strided_slice %128 {offsets = [0, 48], sizes = [64, 48], strides = [1, 1]} : vector<64x96xf32> to vector<64x48xf32>
    %131 = arith.maximumf %129, %130 : vector<64x48xf32>
    %132 = vector.shape_cast %131 : vector<64x48xf32> to vector<8x8x48xf32>
    %133 = vector.extract_strided_slice %132 {offsets = [0, 0, 0], sizes = [1, 8, 48], strides = [1, 1, 1]} : vector<8x8x48xf32> to vector<1x8x48xf32>
    %134 = vector.shape_cast %133 : vector<1x8x48xf32> to vector<8x48xf32>
    %135 = vector.extract_strided_slice %132 {offsets = [1, 0, 0], sizes = [1, 8, 48], strides = [1, 1, 1]} : vector<8x8x48xf32> to vector<1x8x48xf32>
    %136 = vector.shape_cast %135 : vector<1x8x48xf32> to vector<8x48xf32>
    %137 = arith.maximumf %134, %136 : vector<8x48xf32>
    %c0_43 = arith.constant 0 : index
    %c0_44 = arith.constant 0 : index
    %c0_45 = arith.constant 0 : index
    %138 = vector.load %arg6[%c0_43, %c0_44, %c0_45] : memref<4x48x128xf32, #tpu.memory_space<vmem>>, vector<1x48x128xf32>
    %139 = vector.shape_cast %138 : vector<1x48x128xf32> to vector<48x128xf32>
    %cst_46 = arith.constant dense<0.000000e+00> : vector<8x128xf32>
    %140 = tpu.matmul %137, %139, %cst_46 {dimension_numbers = #tpu.dot_dimension_numbers<[1], [0], [0], [1], [0, 0, 1, 1], [], []>} : vector<8x48xf32>, vector<48x128xf32>, vector<8x128xf32> -> vector<8x128xf32>
    %141 = vector.extract_strided_slice %132 {offsets = [2, 0, 0], sizes = [1, 8, 48], strides = [1, 1, 1]} : vector<8x8x48xf32> to vector<1x8x48xf32>
    %142 = vector.shape_cast %141 : vector<1x8x48xf32> to vector<8x48xf32>
    %143 = vector.extract_strided_slice %132 {offsets = [3, 0, 0], sizes = [1, 8, 48], strides = [1, 1, 1]} : vector<8x8x48xf32> to vector<1x8x48xf32>
    %144 = vector.shape_cast %143 : vector<1x8x48xf32> to vector<8x48xf32>
    %145 = arith.maximumf %142, %144 : vector<8x48xf32>
    %c1_47 = arith.constant 1 : index
    %c0_48 = arith.constant 0 : index
    %c0_49 = arith.constant 0 : index
    %146 = vector.load %arg6[%c1_47, %c0_48, %c0_49] : memref<4x48x128xf32, #tpu.memory_space<vmem>>, vector<1x48x128xf32>
    %147 = vector.shape_cast %146 : vector<1x48x128xf32> to vector<48x128xf32>
    %cst_50 = arith.constant dense<0.000000e+00> : vector<8x128xf32>
    %148 = tpu.matmul %145, %147, %cst_50 {dimension_numbers = #tpu.dot_dimension_numbers<[1], [0], [0], [1], [0, 0, 1, 1], [], []>} : vector<8x48xf32>, vector<48x128xf32>, vector<8x128xf32> -> vector<8x128xf32>
    %149 = arith.addf %140, %148 : vector<8x128xf32>
    %150 = vector.extract_strided_slice %132 {offsets = [4, 0, 0], sizes = [1, 8, 48], strides = [1, 1, 1]} : vector<8x8x48xf32> to vector<1x8x48xf32>
    %151 = vector.shape_cast %150 : vector<1x8x48xf32> to vector<8x48xf32>
    %152 = vector.extract_strided_slice %132 {offsets = [5, 0, 0], sizes = [1, 8, 48], strides = [1, 1, 1]} : vector<8x8x48xf32> to vector<1x8x48xf32>
    %153 = vector.shape_cast %152 : vector<1x8x48xf32> to vector<8x48xf32>
    %154 = arith.maximumf %151, %153 : vector<8x48xf32>
    %c2_51 = arith.constant 2 : index
    %c0_52 = arith.constant 0 : index
    %c0_53 = arith.constant 0 : index
    %155 = vector.load %arg6[%c2_51, %c0_52, %c0_53] : memref<4x48x128xf32, #tpu.memory_space<vmem>>, vector<1x48x128xf32>
    %156 = vector.shape_cast %155 : vector<1x48x128xf32> to vector<48x128xf32>
    %cst_54 = arith.constant dense<0.000000e+00> : vector<8x128xf32>
    %157 = tpu.matmul %154, %156, %cst_54 {dimension_numbers = #tpu.dot_dimension_numbers<[1], [0], [0], [1], [0, 0, 1, 1], [], []>} : vector<8x48xf32>, vector<48x128xf32>, vector<8x128xf32> -> vector<8x128xf32>
    %158 = arith.addf %149, %157 : vector<8x128xf32>
    %159 = vector.extract_strided_slice %132 {offsets = [6, 0, 0], sizes = [1, 8, 48], strides = [1, 1, 1]} : vector<8x8x48xf32> to vector<1x8x48xf32>
    %160 = vector.shape_cast %159 : vector<1x8x48xf32> to vector<8x48xf32>
    %161 = vector.extract_strided_slice %132 {offsets = [7, 0, 0], sizes = [1, 8, 48], strides = [1, 1, 1]} : vector<8x8x48xf32> to vector<1x8x48xf32>
    %162 = vector.shape_cast %161 : vector<1x8x48xf32> to vector<8x48xf32>
    %163 = arith.maximumf %160, %162 : vector<8x48xf32>
    %c3_55 = arith.constant 3 : index
    %c0_56 = arith.constant 0 : index
    %c0_57 = arith.constant 0 : index
    %164 = vector.load %arg6[%c3_55, %c0_56, %c0_57] : memref<4x48x128xf32, #tpu.memory_space<vmem>>, vector<1x48x128xf32>
    %165 = vector.shape_cast %164 : vector<1x48x128xf32> to vector<48x128xf32>
    %cst_58 = arith.constant dense<0.000000e+00> : vector<8x128xf32>
    %166 = tpu.matmul %163, %165, %cst_58 {dimension_numbers = #tpu.dot_dimension_numbers<[1], [0], [0], [1], [0, 0, 1, 1], [], []>} : vector<8x48xf32>, vector<48x128xf32>, vector<8x128xf32> -> vector<8x128xf32>
    %167 = arith.addf %158, %166 : vector<8x128xf32>
    %c0_59 = arith.constant 0 : index
    %c0_60 = arith.constant 0 : index
    %168 = vector.load %arg7[%c0_59, %c0_60] : memref<1x128xf32, #tpu.memory_space<vmem>>, vector<1x128xf32>
    %169 = vector.broadcast %168 : vector<1x128xf32> to vector<8x128xf32>
    %170 = arith.addf %167, %169 : vector<8x128xf32>
    %cst_61 = arith.constant 0.000000e+00 : f32
    %171 = vector.broadcast %cst_61 : f32 to vector<8x128xf32>
    %172 = arith.maximumf %170, %171 : vector<8x128xf32>
    %c0_62 = arith.constant 0 : index
    %c0_63 = arith.constant 0 : index
    %173 = vector.load %arg8[%c0_62, %c0_63] : memref<128x128xf32, #tpu.memory_space<vmem>>, vector<128x128xf32>
    %cst_64 = arith.constant dense<0.000000e+00> : vector<8x128xf32>
    %174 = tpu.matmul %172, %173, %cst_64 {dimension_numbers = #tpu.dot_dimension_numbers<[1], [0], [0], [1], [0, 0, 1, 1], [], []>} : vector<8x128xf32>, vector<128x128xf32>, vector<8x128xf32> -> vector<8x128xf32>
    %c0_65 = arith.constant 0 : index
    %c0_66 = arith.constant 0 : index
    %175 = vector.load %arg9[%c0_65, %c0_66] : memref<1x128xf32, #tpu.memory_space<vmem>>, vector<1x128xf32>
    %176 = vector.broadcast %175 : vector<1x128xf32> to vector<8x128xf32>
    %177 = arith.addf %174, %176 : vector<8x128xf32>
    %cst_67 = arith.constant 0.000000e+00 : f32
    %178 = vector.broadcast %cst_67 : f32 to vector<8x128xf32>
    %179 = arith.maximumf %177, %178 : vector<8x128xf32>
    %c0_68 = arith.constant 0 : index
    %c0_69 = arith.constant 0 : index
    %180 = vector.load %arg10[%c0_68, %c0_69] : memref<128x10xf32, #tpu.memory_space<vmem>>, vector<128x10xf32>
    %cst_70 = arith.constant dense<0.000000e+00> : vector<8x10xf32>
    %181 = tpu.matmul %179, %180, %cst_70 {dimension_numbers = #tpu.dot_dimension_numbers<[1], [0], [0], [1], [0, 0, 1, 1], [], []>} : vector<8x128xf32>, vector<128x10xf32>, vector<8x10xf32> -> vector<8x10xf32>
    %c0_71 = arith.constant 0 : index
    %c0_72 = arith.constant 0 : index
    %182 = vector.load %arg11[%c0_71, %c0_72] : memref<1x10xf32, #tpu.memory_space<vmem>>, vector<1x10xf32>
    %183 = vector.broadcast %182 : vector<1x10xf32> to vector<8x10xf32>
    %184 = arith.addf %181, %183 : vector<8x10xf32>
    %c0_73 = arith.constant 0 : index
    %c0_74 = arith.constant 0 : index
    %185 = vector.load %arg12[%c0_73, %c0_74] : memref<8x10xf32, #tpu.memory_space<vmem>>, vector<8x10xf32>
    tpu.vector_store %arg12[%c0_73, %c0_74], %184 {strides = array<i32>} : memref<8x10xf32, #tpu.memory_space<vmem>>, vector<8x10xf32>,
    return
  }
  func.func @transform_0(%arg0: i32) -> (i32, i32, i32) {
    %c0_i32 = arith.constant 0 : i32
    %c0_i32_0 = arith.constant 0 : i32
    %c0_i32_1 = arith.constant 0 : i32
    return %c0_i32, %arg0, %c0_i32_0 : i32, i32, i32
  }
  func.func @transform_1(%arg0: i32) -> (i32, i32, i32) {
    %c0_i32 = arith.constant 0 : i32
    %c0_i32_0 = arith.constant 0 : i32
    %c0_i32_1 = arith.constant 0 : i32
    %c0_i32_2 = arith.constant 0 : i32
    return %c0_i32, %c0_i32_0, %c0_i32_1 : i32, i32, i32
  }
  func.func @transform_2(%arg0: i32) -> (i32, i32) {
    %c0_i32 = arith.constant 0 : i32
    %c0_i32_0 = arith.constant 0 : i32
    %c0_i32_1 = arith.constant 0 : i32
    return %c0_i32, %c0_i32_0 : i32, i32
  }
  func.func @transform_3(%arg0: i32) -> (i32, i32, i32) {
    %c0_i32 = arith.constant 0 : i32
    %c0_i32_0 = arith.constant 0 : i32
    %c0_i32_1 = arith.constant 0 : i32
    %c0_i32_2 = arith.constant 0 : i32
    return %c0_i32, %c0_i32_0, %c0_i32_1 : i32, i32, i32
  }
  func.func @transform_4(%arg0: i32) -> (i32, i32) {
    %c0_i32 = arith.constant 0 : i32
    %c0_i32_0 = arith.constant 0 : i32
    %c0_i32_1 = arith.constant 0 : i32
    return %c0_i32, %c0_i32_0 : i32, i32
  }
  func.func @transform_5(%arg0: i32) -> (i32, i32, i32) {
    %c0_i32 = arith.constant 0 : i32
    %c0_i32_0 = arith.constant 0 : i32
    %c0_i32_1 = arith.constant 0 : i32
    %c0_i32_2 = arith.constant 0 : i32
    return %c0_i32, %c0_i32_0, %c0_i32_1 : i32, i32, i32
  }
  func.func @transform_6(%arg0: i32) -> (i32, i32) {
    %c0_i32 = arith.constant 0 : i32
    %c0_i32_0 = arith.constant 0 : i32
    %c0_i32_1 = arith.constant 0 : i32
    return %c0_i32, %c0_i32_0 : i32, i32
  }
  func.func @transform_7(%arg0: i32) -> (i32, i32) {
    %c0_i32 = arith.constant 0 : i32
    %c0_i32_0 = arith.constant 0 : i32
    %c0_i32_1 = arith.constant 0 : i32
    return %c0_i32, %c0_i32_0 : i32, i32
  }
  func.func @transform_8(%arg0: i32) -> (i32, i32) {
    %c0_i32 = arith.constant 0 : i32
    %c0_i32_0 = arith.constant 0 : i32
    %c0_i32_1 = arith.constant 0 : i32
    return %c0_i32, %c0_i32_0 : i32, i32
  }
  func.func @transform_9(%arg0: i32) -> (i32, i32) {
    %c0_i32 = arith.constant 0 : i32
    %c0_i32_0 = arith.constant 0 : i32
    %c0_i32_1 = arith.constant 0 : i32
    return %c0_i32, %c0_i32_0 : i32, i32
  }
  func.func @transform_10(%arg0: i32) -> (i32, i32) {
    %c0_i32 = arith.constant 0 : i32
    %c0_i32_0 = arith.constant 0 : i32
    %c0_i32_1 = arith.constant 0 : i32
    return %c0_i32, %c0_i32_0 : i32, i32
  }
  func.func @transform_11(%arg0: i32) -> (i32, i32) {
    %c0_i32 = arith.constant 0 : i32
    %c0_i32_0 = arith.constant 0 : i32
    return %arg0, %c0_i32 : i32, i32
  }
}

</mosaic_0001>

<bundles_post_ra>
// kernel: network_forward.1
= control target key start
LH: loop header
LB: loop body
LE: loop exit
PB: predicated region body
PF: predicated region fallthrough
CT: control target
= control target key end

     0   :  { %s6547_s0 = inlined_call_operand.vmem [shape: f32[28,16,28], index: 0, kind: input, shape index: {}]   ;;  %s6548_s1 = inlined_call_operand.vmem [shape: f32[5,28,144], index: 1, kind: input, shape index: {}]   ;;  %s6549_s2 = inlined_call_operand.vmem [shape: f32[1,144], index: 2, kind: input, shape index: {}]   ;;  %s6550_s3 = inlined_call_operand.vmem [shape: f32[5,72,96], index: 3, kind: input, shape index: {}]   ;;  %s6551_s4 = inlined_call_operand.vmem [shape: f32[1,96], index: 4, kind: input, shape index: {}]   ;;  %s6552_s5 = inlined_call_operand.vmem [shape: f32[4,48,128], index: 5, kind: input, shape index: {}]   ;;  %s6553_s6 = inlined_call_operand.vmem [shape: f32[1,128], index: 6, kind: input, shape index: {}]   ;;  %s6554_s7 = inlined_call_operand.vmem [shape: f32[128,128], index: 7, kind: input, shape index: {}]   ;;  %s6555_s8 = inlined_call_operand.vmem [shape: f32[1,128], index: 8, kind: input, shape index: {}]   ;;  %s6556_s9 = inlined_call_operand.vmem [shape: f32[128,10], index: 9, kind: input, shape index: {}]   ;;  %s6557_s10 = inlined_call_operand.vmem [shape: f32[1,10], index: 10, kind: input, shape index: {}]   ;;  %s6558_s11 = inlined_call_operand.hbm [shape: f32[16,10], index: 11, kind: output, shape index: {}]  }
   0x1   :  { %6560 = sst [smem:[#allocation6_spill]] %s6547_s0 }
   0x2   :  { %16 = vsyncpa [#allocation4], 0 }
   0x3   :  { %18 = vsyncpa [#allocation4 + $0x1], 0  ;;  %s4863_s17 = smov 0   ;;  %s4865_s18 = smov 0  }
   0x4   :  { %s4867_s19 = smov 0   ;;  %s4869_s20 = smov 0  }
   0x5 LB: > { %s6559_s21 = sadd.s32 4294967295, %s4794_s20   ;;  %s3542_s22 = sadd.s32 4294967294, %s4794_s20   ;;  %s4794_s20 = sphi %s4869_s20, %s6570_s20   ;;  %s4790_s19 = sphi %s4867_s19, %s6569_s19   ;;  %s4786_s18 = sphi %s4865_s18, %s6568_s18   ;;  %s4782_s17 = sphi %s4863_s17, %s6567_s17  }
   0x6   : > { %s4886_s23 = sadd.s32 1, %s4794_s20   ;;  %s31_s24 = sadd.s32 1, %s4790_s19 }
   0x7   : > { %s28_s25 = ssub.s32 %s4794_s20, %s4886_s23  ;;  %p38_p0 = scmp.ne.s32.totalorder %s4790_s19, %s4786_s18 }
   0x8   : > { %p29_p1 = scmp.eq.s32.totalorder %s28_s25, 0  ;;  %p39_p2 = scmp.eq.s32.totalorder %s4794_s20, 0 }
   0x9   : > { %p278_p3 = scmp.eq.s32.totalorder %s6559_s21, 1  ;;  %p283_p4 = scmp.ne.s32.totalorder %s4786_s18, %s4782_s17 }
   0xa   : > { %s4899_s26 = scalar_select %p29_p1, %s4790_s19, %s31_s24  }
   0xb   : > { %p40_p5 = por %p39_p2, %p38_p0  ;;  %p4901_p6 = por %p278_p3, %p38_p0 }
   0xc   : > { %p284_p7 = scmp.eq.s32.totalorder %s3542_s22, 1  ;;  %p3544_p9 = scmp.ge.s32.totalorder %s4794_s20, 2 }
   0xe   : > { %p4905_p8 = por %p284_p7, %p283_p4  ;;  %330 = sbr.rel (%p3544_p9) target bundleno = 45 (0x2d), region = 56 }
  0x15   : > { %333 = sbr.rel (!%p40_p5) target bundleno = 45 (0x2d), region = 60  ;;  %s335_s29 = sand.u32 (%p40_p5), 1, %s4790_s19  }
  0x16   : > { %s3545_s30 = sshll.u32 (%p40_p5), %s4794_s20, 3  ;;  %s4685_s12 = smul.u32 (%p40_p5), 224, %s335_s29 }
  0x17   : > { %s6563_s0 = sld [smem:[#allocation6_spill]] (%p40_p5) }
  0x18   : > { %s4925_s16 = scalar_lea.vmem (%p40_p5), [#allocation2], %s4685_s12 }
  0x1d   : > { %s4917_s15 = scalar_lea.vmem %s6563_s0, %s3545_s30 }
  0x1e   : > { %v421_v0 = vld [vmem:[%s4917_s15] sm:$0xff]  ;;  %v423_v1 = vld [vmem:[%s4917_s15 + $0x10] sm:$0xff] }
  0x1f   : > { %v425_v2 = vld [vmem:[%s4917_s15 + $0x20] sm:$0xff]  ;;  %v427_v3 = vld [vmem:[%s4917_s15 + $0x30] sm:$0xff]  ;;  %422 = vst [vmem:[%s4925_s16] sm:$0xff] %v421_v0  ;;  %424 = vst [vmem:[%s4925_s16 + $0x8] sm:$0xff] %v423_v1 }
  0x20   : > { %v429_v4 = vld [vmem:[%s4917_s15 + $0x40] sm:$0xff]  ;;  %v431_v5 = vld [vmem:[%s4917_s15 + $0x50] sm:$0xff]  ;;  %426 = vst [vmem:[%s4925_s16 + $0x10] sm:$0xff] %v425_v2  ;;  %428 = vst [vmem:[%s4925_s16 + $0x18] sm:$0xff] %v427_v3 }
  0x21   : > { %430 = vst [vmem:[%s4925_s16 + $0x20] sm:$0xff] %v429_v4  ;;  %432 = vst [vmem:[%s4925_s16 + $0x28] sm:$0xff] %v431_v5  ;;  %v433_v6 = vld [vmem:[%s4917_s15 + $0x60] sm:$0xff]  ;;  %v435_v7 = vld [vmem:[%s4917_s15 + $0x70] sm:$0xff] }
  0x22   : > { %v437_v8 = vld [vmem:[%s4917_s15 + $0x80] sm:$0xff]  ;;  %434 = vst [vmem:[%s4925_s16 + $0x30] sm:$0xff] %v433_v6  ;;  %436 = vst [vmem:[%s4925_s16 + $0x38] sm:$0xff] %v435_v7  ;;  %v439_v9 = vld [vmem:[%s4917_s15 + $0x90] sm:$0xff] }
  0x23   : > { %438 = vst [vmem:[%s4925_s16 + $0x40] sm:$0xff] %v437_v8  ;;  %v441_v10 = vld [vmem:[%s4917_s15 + $0xa0] sm:$0xff]  ;;  %v443_v11 = vld [vmem:[%s4917_s15 + $0xb0] sm:$0xff]  ;;  %440 = vst [vmem:[%s4925_s16 + $0x48] sm:$0xff] %v439_v9 }
  0x24   : > { %442 = vst [vmem:[%s4925_s16 + $0x50] sm:$0xff] %v441_v10  ;;  %444 = vst [vmem:[%s4925_s16 + $0x58] sm:$0xff] %v443_v11  ;;  %v445_v12 = vld [vmem:[%s4917_s15 + $0xc0] sm:$0xff]  ;;  %v447_v13 = vld [vmem:[%s4917_s15 + $0xd0] sm:$0xff] }
  0x25   : > { %v449_v14 = vld [vmem:[%s4917_s15 + $0xe0] sm:$0xff]  ;;  %446 = vst [vmem:[%s4925_s16 + $0x60] sm:$0xff] %v445_v12  ;;  %448 = vst [vmem:[%s4925_s16 + $0x68] sm:$0xff] %v447_v13  ;;  %v451_v15 = vld [vmem:[%s4917_s15 + $0xf0] sm:$0xff] }
  0x26   : > { %450 = vst [vmem:[%s4925_s16 + $0x70] sm:$0xff] %v449_v14  ;;  %v453_v16 = vld [vmem:[%s4917_s15 + $0x100] sm:$0xff]  ;;  %v455_v17 = vld [vmem:[%s4917_s15 + $0x110] sm:$0xff]  ;;  %452 = vst [vmem:[%s4925_s16 + $0x78] sm:$0xff] %v451_v15 }
  0x27   : > { %454 = vst [vmem:[%s4925_s16 + $0x80] sm:$0xff] %v453_v16  ;;  %456 = vst [vmem:[%s4925_s16 + $0x88] sm:$0xff] %v455_v17  ;;  %v457_v18 = vld [vmem:[%s4917_s15 + $0x120] sm:$0xff]  ;;  %v459_v19 = vld [vmem:[%s4917_s15 + $0x130] sm:$0xff] }
  0x28   : > { %v461_v20 = vld [vmem:[%s4917_s15 + $0x140] sm:$0xff]  ;;  %458 = vst [vmem:[%s4925_s16 + $0x90] sm:$0xff] %v457_v18  ;;  %460 = vst [vmem:[%s4925_s16 + $0x98] sm:$0xff] %v459_v19  ;;  %v463_v21 = vld [vmem:[%s4917_s15 + $0x150] sm:$0xff] }
  0x29   : > { %462 = vst [vmem:[%s4925_s16 + $0xa0] sm:$0xff] %v461_v20  ;;  %v465_v22 = vld [vmem:[%s4917_s15 + $0x160] sm:$0xff]  ;;  %v467_v23 = vld [vmem:[%s4917_s15 + $0x170] sm:$0xff]  ;;  %464 = vst [vmem:[%s4925_s16 + $0xa8] sm:$0xff] %v463_v21 }
  0x2a   : > { %466 = vst [vmem:[%s4925_s16 + $0xb0] sm:$0xff] %v465_v22  ;;  %468 = vst [vmem:[%s4925_s16 + $0xb8] sm:$0xff] %v467_v23  ;;  %v469_v24 = vld [vmem:[%s4917_s15 + $0x180] sm:$0xff]  ;;  %v471_v25 = vld [vmem:[%s4917_s15 + $0x190] sm:$0xff] }
  0x2b   : > { %v473_v26 = vld [vmem:[%s4917_s15 + $0x1a0] sm:$0xff]  ;;  %470 = vst [vmem:[%s4925_s16 + $0xc0] sm:$0xff] %v469_v24  ;;  %472 = vst [vmem:[%s4925_s16 + $0xc8] sm:$0xff] %v471_v25  ;;  %v475_v27 = vld [vmem:[%s4917_s15 + $0x1b0] sm:$0xff] }
  0x2c   : > { %474 = vst [vmem:[%s4925_s16 + $0xd0] sm:$0xff] %v473_v26  ;;  %476 = vst [vmem:[%s4925_s16 + $0xd8] sm:$0xff] %v475_v27 }
  0x2d PF: > { %p3546_p10 = scmp.ge.s32.totalorder %s4794_s20, 1  ;;  %p481_p11 = scmp.lt.s32.totalorder %s4794_s20, 3 }
  0x2f   : > { %p482_p12 = pnand %p3546_p10, %p481_p11 }
  0x30   : > { %v556_v28 = vld [vmem:[%s6548_s1 + $0x8] sm:$0xff] (!%p482_p12)  ;;  %v558_v29 = vld [vmem:[%s6548_s1 + $0x18] sm:$0xff] (!%p482_p12)  ;;  %v555_v30 = vld [vmem:[%s6548_s1] sm:$0xff] (!%p482_p12)  ;;  %vm645_vm0 = vcmask (!%p482_p12), 1043456   ;;  %v4796_v35 = vmov (!%p482_p12), 0.0   ;;  %s5001_s25 = sand.u32 (!%p482_p12), 1, %s4786_s18  }
  0x31   : > { %485 = sbr.rel (%p482_p12) target bundleno = 1806 (0x70e), region = 98  ;;  %v4988_v31 = vpack.c.bf16 (!%p482_p12), %v558_v29, %v556_v28  ;;  %v557_v32 = vld [vmem:[%s6548_s1 + $0x10] sm:$0xff] (!%p482_p12)  ;;  %v560_v33 = vld [vmem:[%s6548_s1 + $0x28] sm:$0xff] (!%p482_p12)  ;;  %v562_v34 = vld [vmem:[%s6548_s1 + $0x38] sm:$0xf] (!%p482_p12)  ;;  %934 = vmatprep.mubr.f32.mxu0 (!%p482_p12), %v4796_v35  ;;  %716 = vmatprep.mubr.f32.mxu1 (!%p482_p12), %v4796_v35  ;;  %vm4797_vm1 = vmmov (!%p482_p12), 1  }
  0x32   : > { %v5004_v36 = vpack.c.bf16 (!%p482_p12), %v557_v32, %v555_v30  ;;  %vm5006_vm2 = vmpackc.low (!%p482_p12), %vm645_vm0, %vm4797_vm1  ;;  %v5010_v38 = vpack.c.bf16 (!%p482_p12), %v562_v34, %v560_v33  ;;  %v559_v39 = vld [vmem:[%s6548_s1 + $0x20] sm:$0xff] (!%p482_p12)  ;;  %v561_v40 = vld [vmem:[%s6548_s1 + $0x30] sm:$0xf] (!%p482_p12)  ;;  %s4686_s14 = smul.u32 (!%p482_p12), 224, %s5001_s25  ;;  %vm572_vm3 = vcmask (!%p482_p12), 228352   ;;  %vm2156_vm4 = vcmask (!%p482_p12), 457728  }
  0x33   : > { %4254 = vmatprep.subr.bf16.mxu0 (!%p482_p12), %v4988_v31  ;;  %v3609_v41 = vld [vmem:[%s6548_s1 + $0x88] sm:$0xff] (!%p482_p12)  ;;  %v3611_v42 = vld [vmem:[%s6548_s1 + $0x98] sm:$0xff] (!%p482_p12)  ;;  %v5027_v43 = vpack.c.bf16 (!%p482_p12), %v561_v40, %v559_v39  ;;  %v3608_v45 = vld [vmem:[%s6548_s1 + $0x80] sm:$0xff] (!%p482_p12)  ;;  %vm2260_vm5 = vcmask (!%p482_p12), 588800   ;;  %vm4800_vm6 = vmmov (!%p482_p12), 0   ;;  %s4801_s15 = smov (!%p482_p12), 80  }
  0x34   : > { %4256 = vmatpush1.bf16.msra.mxu0 (!%p482_p12), %v5004_v36  ;;  %v4263_v44 = vpack.c.bf16 (!%p482_p12), %v3611_v42, %v3609_v41  ;;  %v3610_v46 = vld [vmem:[%s6548_s1 + $0x90] sm:$0xff] (!%p482_p12)  ;;  %v3613_v47 = vld [vmem:[%s6548_s1 + $0xa8] sm:$0xff] (!%p482_p12)  ;;  %v3615_v48 = vld [vmem:[%s6548_s1 + $0xb8] sm:$0xf] (!%p482_p12)  ;;  %s5047_s21 = scalar_lea.vmem (!%p482_p12), [#allocation2], %s4686_s14  ;;  %vm2954_vm7 = vcmask (!%p482_p12), 392192  }
  0x35   : > { %4259 = vmatprep.subr.msk.bf16.mxu0 (!%p482_p12), %vm5006_vm2, %v5010_v38  ;;  %v527_v49 = vld [vmem:[%s5047_s21] sm:$0xff] (!%p482_p12)  ;;  %v4265_v50 = vpack.c.bf16 (!%p482_p12), %v3610_v46, %v3608_v45  ;;  %v4267_v51 = vpack.c.bf16 (!%p482_p12), %v3615_v48, %v3613_v47  ;;  %v3614_v53 = vld [vmem:[%s6548_s1 + $0xb0] sm:$0xf] (!%p482_p12)  ;;  %v3643_v54 = vld [vmem:[%s6548_s1 + $0xc8] sm:$0xff] (!%p482_p12)  ;;  %s3547_s29 = sshll.u32 (!%p482_p12), %s5001_s25, 3  ;;  %vm3461_vm8 = vcmask (!%p482_p12), 80896  }
  0x36   : > { %v3612_v52 = vld [vmem:[%s6548_s1 + $0xa0] sm:$0xff] (!%p482_p12)  ;;  %v3645_v55 = vld [vmem:[%s6548_s1 + $0xd8] sm:$0xff] (!%p482_p12)  ;;  %v528_v56 = vld [vmem:[%s5047_s21 + $0x8] sm:$0xff] (!%p482_p12)  ;;  %s3464_s30 = scalar_lea.sflag (!%p482_p12), [#allocation4], %s5001_s25 }
  0x37   : > { %v4270_v57 = vpack.c.bf16 (!%p482_p12), %v3614_v53, %v3612_v52  ;;  %v4273_v58 = vpack.c.bf16 (!%p482_p12), %v3645_v55, %v3643_v54  ;;  %v5070_v59 = vld [vmem:[%s5047_s21 + $0x10] sm:$0xff] (!%p482_p12)  ;;  %v3549_v60 = vld [vmem:[%s6548_s1 + $0x48] sm:$0xff] (!%p482_p12)  ;;  %v3551_v61 = vld [vmem:[%s6548_s1 + $0x58] sm:$0xff] (!%p482_p12) }
  0x38   : > { %4262 = vmatpush1.bf16.msk.msra.mxu0 %vm5006_vm2, %v5027_v43  ;;  %v4243_v62 = vpack.c.bf16 %v3551_v61, %v3549_v60  ;;  %v3548_v63 = vld [vmem:[%s6548_s1 + $0x40] sm:$0xff]  ;;  %v3550_v0 = vld [vmem:[%s6548_s1 + $0x50] sm:$0xff]  ;;  %v5090_v1 = vld [vmem:[%s5047_s21 + $0x18] sm:$0xff] }
  0x39   : > { %4264 = vmatprep.subr.bf16.mxu0 %v4263_v44  ;;  %v4245_v2 = vpack.c.bf16 %v3550_v0, %v3548_v63  ;;  %v3553_v3 = vld [vmem:[%s6548_s1 + $0x68] sm:$0xff]  ;;  %v3555_v4 = vld [vmem:[%s6548_s1 + $0x78] sm:$0xf]  ;;  %v3552_v6 = vld [vmem:[%s6548_s1 + $0x60] sm:$0xff] }
  0x3a   : > { %4244 = vmatprep.subr.bf16.mxu1 %v4243_v62  ;;  %v4247_v5 = vpack.c.bf16 %v3555_v4, %v3553_v3  ;;  %v3554_v7 = vld [vmem:[%s6548_s1 + $0x70] sm:$0xf]  ;;  %v5108_v8 = vld [vmem:[%s5047_s21 + $0x20] sm:$0xff]  ;;  %v5119_v10 = vld [vmem:[%s5047_s21 + $0x28] sm:$0xff] }
  0x3b   : > { %3584 = vmatmul.mubr.msk.f32.vlgmr.msra.gmra.mrb[0].mxu0 %vm572_vm3, %v527_v49  ;;  %4246 = vmatpush1.bf16.msra.mxu1 %v4245_v2  ;;  %v4250_v9 = vpack.c.bf16 %v3554_v7, %v3552_v6  ;;  %v5131_v11 = vld [vmem:[%s5047_s21 + $0x30] sm:$0xff]  ;;  %v5143_v12 = vld [vmem:[%s5047_s21 + $0x38] sm:$0xff]  ;;  %v5152_v13 = vld [vmem:[%s5047_s21 + $0x40] sm:$0xff] }
  0x3c   : > { %4266 = vmatpush1.bf16.msra.mxu0 %v4265_v50  ;;  %940 = vmatprep.mubr.f32.mxu0 %v4796_v35  ;;  %v5161_v14 = vld [vmem:[%s5047_s21 + $0x48] sm:$0xff]  ;;  %v5170_v15 = vld [vmem:[%s5047_s21 + $0x50] sm:$0xff]  ;;  %v5179_v16 = vld [vmem:[%s5047_s21 + $0x58] sm:$0xff] }
  0x3d   : > { %4269 = vmatprep.subr.msk.bf16.mxu0 %vm5006_vm2, %v4267_v51  ;;  %4249 = vmatprep.subr.msk.bf16.mxu1 %vm5006_vm2, %v4247_v5  ;;  %v3642_v17 = vld [vmem:[%s6548_s1 + $0xc0] sm:$0xff]  ;;  %v3644_v18 = vld [vmem:[%s6548_s1 + $0xd0] sm:$0xff]  ;;  %v3647_v19 = vld [vmem:[%s6548_s1 + $0xe8] sm:$0xff] }
  0x3e   : > { %v3649_v20 = vld [vmem:[%s6548_s1 + $0xf8] sm:$0xf]  ;;  %v4275_v21 = vpack.c.bf16 %v3644_v18, %v3642_v17  ;;  %v3646_v23 = vld [vmem:[%s6548_s1 + $0xe0] sm:$0xff]  ;;  %v3648_v24 = vld [vmem:[%s6548_s1 + $0xf0] sm:$0xf] }
  0x3f   : > { %3585 = vmatmul.mubr.msk.f32.gmra.mrb[2].mxu0 %vm572_vm3, %v528_v56  ;;  %4252 = vmatpush1.bf16.msk.msra.mxu1 %vm5006_vm2, %v4250_v9  ;;  %v4277_v22 = vpack.c.bf16 %v3649_v20, %v3647_v19  ;;  %v3677_v25 = vld [vmem:[%s6548_s1 + $0x108] sm:$0xff]  ;;  %v3679_v26 = vld [vmem:[%s6548_s1 + $0x118] sm:$0xff]  ;;  %v4280_v27 = vpack.c.bf16 %v3648_v24, %v3646_v23  ;;  %v5240_v29 = vld [vmem:[%s5047_s21 + $0x60] sm:$0xff] }
  0x40   : > { %946 = vmatprep.mubr.f32.mxu0 %v4796_v35  ;;  %4272 = vmatpush1.bf16.msk.msra.mxu0 %vm5006_vm2, %v4270_v57  ;;  %v4283_v28 = vpack.c.bf16 %v3679_v26, %v3677_v25  ;;  %v5249_v30 = vld [vmem:[%s5047_s21 + $0x68] sm:$0xff]  ;;  %v5267_v32 = vld [vmem:[%s5047_s21 + $0x78] sm:$0xff]  ;;  %v5276_v33 = vld [vmem:[%s5047_s21 + $0x80] sm:$0xff] }
  0x41   : > { %4274 = vmatprep.subr.bf16.mxu0 %v4273_v58  ;;  %4457 = vmatprep.subr.bf16.mxu1 %v4988_v31  ;;  %v5258_v31 = vld [vmem:[%s5047_s21 + $0x70] sm:$0xff]  ;;  %v5285_v34 = vld [vmem:[%s5047_s21 + $0x88] sm:$0xff]  ;;  %v5312_v39 = vld [vmem:[%s5047_s21 + $0xa0] sm:$0xff] }
  0x42   : > { %3558 = vmatmul.mubr.msk.f32.vlgmr.msra.gmra.mrb[0].mxu1 %vm572_vm3, %v528_v56  ;;  %v5321_v40 = vld [vmem:[%s5047_s21 + $0xa8] sm:$0xff]  ;;  %v5330_v41 = vld [vmem:[%s5047_s21 + $0xb0] sm:$0xff]  ;;  %v5339_v42 = vld [vmem:[%s5047_s21 + $0xb8] sm:$0xff] }
  0x43   : > { %3586 = vmatmul.mubr.msk.f32.gmra.mrb[4].mxu0 %vm572_vm3, %v5070_v59  ;;  %722 = vmatprep.mubr.f32.mxu1 %v4796_v35  ;;  %v5393_v44 = vld [vmem:[%s5047_s21 + $0xc8] sm:$0xff]  ;;  %v3676_v45 = vld [vmem:[%s6548_s1 + $0x100] sm:$0xff]  ;;  %v3678_v46 = vld [vmem:[%s6548_s1 + $0x110] sm:$0xff] }
  0x44   : > { %952 = vmatprep.mubr.f32.mxu0 %v4796_v35  ;;  %4459 = vmatpush1.bf16.msra.mxu1 %v5004_v36  ;;  %v5294_v36 = vld [vmem:[%s5047_s21 + $0x90] sm:$0xff]  ;;  %v3681_v47 = vld [vmem:[%s6548_s1 + $0x128] sm:$0xff]  ;;  %v3683_v48 = vld [vmem:[%s6548_s1 + $0x138] sm:$0xf]  ;;  %v4285_v49 = vpack.c.bf16 %v3678_v46, %v3676_v45 }
  0x45   : > { %4458 = vmatprep.subr.msk.bf16.mxu1 %vm5006_vm2, %v5010_v38  ;;  %v5303_v38 = vld [vmem:[%s5047_s21 + $0x98] sm:$0xff]  ;;  %v4287_v50 = vpack.c.bf16 %v3683_v48, %v3681_v47  ;;  %v3680_v51 = vld [vmem:[%s6548_s1 + $0x120] sm:$0xff]  ;;  %v3682_v52 = vld [vmem:[%s6548_s1 + $0x130] sm:$0xf] }
  0x46   : > { %3559 = vmatmul.mubr.msk.f32.gmra.mrb[2].mxu1 %vm572_vm3, %v5070_v59  ;;  %v4290_v53 = vpack.c.bf16 %v3682_v52, %v3680_v51  ;;  %v5511_v55 = vld [vmem:[%s5047_s21 + $0xd0] sm:$0xff]  ;;  %v3710_v51 = vld [vmem:[%s6550_s3 + $0x48] sm:$0xff] }
  0x47   : > { %3587 = vmatmul.mubr.msk.f32.gmra.mrb[6].mxu0 %vm572_vm3, %v5090_v1  ;;  %728 = vmatprep.mubr.f32.mxu1 %v4796_v35  ;;  %v3711_v52 = vld [vmem:[%s6550_s3 + $0x50] sm:$0xff] }
  0x48   : > { %958 = vmatprep.mubr.f32.mxu0 %v4796_v35  ;;  %4460 = vmatpush1.bf16.msk.msra.mxu1 %vm5006_vm2, %v5027_v43  ;;  %v5348_v43 = vld [vmem:[%s5047_s21 + $0xc0] sm:$0xff] }
  0x4a   : > { %3560 = vmatmul.mubr.msk.f32.gmra.mrb[4].mxu1 %vm572_vm3, %v5090_v1 }
  0x4b   : > { %3588 = vmatmul.mubr.msk.f32.gmra.mrb[8].mxu0 %vm572_vm3, %v5108_v8  ;;  %734 = vmatprep.mubr.f32.mxu1 %v4796_v35 }
  0x4c   : > { %964 = vmatprep.mubr.f32.mxu0 %v4796_v35 }
  0x4e   : > { %3561 = vmatmul.mubr.msk.f32.gmra.mrb[6].mxu1 %vm572_vm3, %v5108_v8 }
  0x4f   : > { %3589 = vmatmul.mubr.msk.f32.gmra.mrb[10].mxu0 %vm572_vm3, %v5119_v10  ;;  %740 = vmatprep.mubr.f32.mxu1 %v4796_v35 }
  0x50   : > { %970 = vmatprep.mubr.f32.mxu0 %v4796_v35 }
  0x52   : > { %3562 = vmatmul.mubr.msk.f32.gmra.mrb[8].mxu1 %vm572_vm3, %v5119_v10 }
  0x53   : > { %3590 = vmatmul.mubr.msk.f32.gmra.mrb[12].mxu0 %vm572_vm3, %v5131_v11  ;;  %746 = vmatprep.mubr.f32.mxu1 %v4796_v35 }
  0x54   : > { %976 = vmatprep.mubr.f32.mxu0 %v4796_v35 }
  0x56   : > { %3563 = vmatmul.mubr.msk.f32.gmra.mrb[10].mxu1 %vm572_vm3, %v5131_v11 }
  0x57   : > { %3591 = vmatmul.mubr.msk.f32.gmra.mrb[14].mxu0 %vm572_vm3, %v5143_v12  ;;  %752 = vmatprep.mubr.f32.mxu1 %v4796_v35 }
  0x58   : > { %982 = vmatprep.mubr.f32.mxu0 %v4796_v35 }
  0x5a   : > { %3564 = vmatmul.mubr.msk.f32.gmra.mrb[12].mxu1 %vm572_vm3, %v5143_v12 }
  0x5b   : > { %3592 = vmatmul.mubr.msk.f32.gmra.mrb[16].mxu0 %vm572_vm3, %v5152_v13  ;;  %758 = vmatprep.mubr.f32.mxu1 %v4796_v35 }
  0x5c   : > { %988 = vmatprep.mubr.f32.mxu0 %v4796_v35 }
  0x5e   : > { %3565 = vmatmul.mubr.msk.f32.gmra.mrb[14].mxu1 %vm572_vm3, %v5152_v13 }
  0x5f   : > { %3593 = vmatmul.mubr.msk.f32.gmra.mrb[18].mxu0 %vm572_vm3, %v5161_v14  ;;  %764 = vmatprep.mubr.f32.mxu1 %v4796_v35 }
  0x60   : > { %994 = vmatprep.mubr.f32.mxu0 %v4796_v35 }
  0x62   : > { %3566 = vmatmul.mubr.msk.f32.gmra.mrb[16].mxu1 %vm572_vm3, %v5161_v14 }
  0x63   : > { %3594 = vmatmul.mubr.msk.f32.gmra.mrb[20].mxu0 %vm572_vm3, %v5170_v15  ;;  %770 = vmatprep.mubr.f32.mxu1 %v4796_v35 }
  0x64   : > { %1000 = vmatprep.mubr.f32.mxu0 %v4796_v35 }
  0x66   : > { %3567 = vmatmul.mubr.msk.f32.gmra.mrb[18].mxu1 %vm572_vm3, %v5170_v15 }
  0x67   : > { %3595 = vmatmul.mubr.msk.f32.gmra.mrb[22].mxu0 %vm572_vm3, %v5179_v16  ;;  %776 = vmatprep.mubr.f32.mxu1 %v4796_v35 }
  0x68   : > { %1161 = vmatprep.mubr.f32.mxu0 %v4796_v35 }
  0x6a   : > { %3568 = vmatmul.mubr.msk.f32.gmra.mrb[20].mxu1 %vm572_vm3, %v5179_v16 }
  0x6b   : > { %3618 = vmatmul.mubr.msk.f32.vlgmr.msra.gmra.mrb[0].mxu0 %vm572_vm3, %v5070_v59  ;;  %782 = vmatprep.mubr.f32.mxu1 %v4796_v35 }
  0x6c   : > { %4276 = vmatpush1.bf16.msra.mxu0 %v4275_v21  ;;  %1167 = vmatprep.mubr.f32.mxu0 %v4796_v35 }
  0x6d   : > { %4279 = vmatprep.subr.msk.bf16.mxu0 %vm5006_vm2, %v4277_v22 }
  0x6e   : > { %3569 = vmatmul.mubr.msk.f32.gmra.mrb[22].mxu1 %vm572_vm3, %v5240_v29 }
  0x6f   : > { %3619 = vmatmul.mubr.msk.f32.gmra.mrb[2].mxu0 %vm572_vm3, %v5090_v1  ;;  %788 = vmatprep.mubr.f32.mxu1 %v4796_v35 }
  0x70   : > { %1173 = vmatprep.mubr.f32.mxu0 %v4796_v35  ;;  %4282 = vmatpush1.bf16.msk.msra.mxu0 %vm5006_vm2, %v4280_v27 }
  0x71   : > { %4284 = vmatprep.subr.bf16.mxu0 %v4283_v28 }
  0x72   : > { %3570 = vmatmul.mubr.msk.f32.gmra.mrb[24].mxu1 %vm572_vm3, %v5249_v30 }
  0x73   : > { %3620 = vmatmul.mubr.msk.f32.gmra.mrb[4].mxu0 %vm572_vm3, %v5108_v8  ;;  %794 = vmatprep.mubr.f32.mxu1 %v4796_v35 }
  0x74   : > { %1179 = vmatprep.mubr.f32.mxu0 %v4796_v35 }
  0x76   : > { %3571 = vmatmul.mubr.msk.f32.gmra.mrb[26].mxu1 %vm572_vm3, %v5258_v31 }
  0x77   : > { %3621 = vmatmul.mubr.msk.f32.gmra.mrb[6].mxu0 %vm572_vm3, %v5119_v10  ;;  %800 = vmatprep.mubr.f32.mxu1 %v4796_v35 }
  0x78   : > { %1185 = vmatprep.mubr.f32.mxu0 %v4796_v35 }
  0x7a   : > { %3572 = vmatmul.mubr.msk.f32.gmra.mrb[28].mxu1 %vm572_vm3, %v5267_v32 }
  0x7b   : > { %3622 = vmatmul.mubr.msk.f32.gmra.mrb[8].mxu0 %vm572_vm3, %v5131_v11  ;;  %806 = vmatprep.mubr.f32.mxu1 %v4796_v35 }
  0x7c   : > { %1191 = vmatprep.mubr.f32.mxu0 %v4796_v35 }
  0x7e   : > { %3573 = vmatmul.mubr.msk.f32.gmra.mrb[30].mxu1 %vm572_vm3, %v5276_v33 }
  0x7f   : > { %3623 = vmatmul.mubr.msk.f32.gmra.mrb[10].mxu0 %vm572_vm3, %v5143_v12  ;;  %812 = vmatprep.mubr.f32.mxu1 %v4796_v35 }
  0x80   : > { %1197 = vmatprep.mubr.f32.mxu0 %v4796_v35 }
  0x82   : > { %3574 = vmatmul.mubr.msk.f32.gmra.mrb[32].mxu1 %vm572_vm3, %v5285_v34 }
  0x83   : > { %3624 = vmatmul.mubr.msk.f32.gmra.mrb[12].mxu0 %vm572_vm3, %v5152_v13  ;;  %818 = vmatprep.mubr.f32.mxu1 %v4796_v35 }
  0x84   : > { %1203 = vmatprep.mubr.f32.mxu0 %v4796_v35 }
  0x86   : > { %3575 = vmatmul.mubr.msk.f32.gmra.mrb[34].mxu1 %vm572_vm3, %v5294_v36 }
  0x87   : > { %3625 = vmatmul.mubr.msk.f32.gmra.mrb[14].mxu0 %vm572_vm3, %v5161_v14  ;;  %824 = vmatprep.mubr.f32.mxu1 %v4796_v35 }
  0x88   : > { %1209 = vmatprep.mubr.f32.mxu0 %v4796_v35 }
  0x8a   : > { %3576 = vmatmul.mubr.msk.f32.gmra.mrb[36].mxu1 %vm572_vm3, %v5303_v38 }
  0x8b   : > { %3626 = vmatmul.mubr.msk.f32.gmra.mrb[16].mxu0 %vm572_vm3, %v5170_v15  ;;  %830 = vmatprep.mubr.f32.mxu1 %v4796_v35 }
  0x8c   : > { %1215 = vmatprep.mubr.f32.mxu0 %v4796_v35 }
  0x8e   : > { %3577 = vmatmul.mubr.msk.f32.gmra.mrb[38].mxu1 %vm572_vm3, %v5312_v39 }
  0x8f   : > { %3627 = vmatmul.mubr.msk.f32.gmra.mrb[18].mxu0 %vm572_vm3, %v5179_v16  ;;  %836 = vmatprep.mubr.f32.mxu1 %v4796_v35 }
  0x90   : > { %1221 = vmatprep.mubr.f32.mxu0 %v4796_v35 }
  0x92   : > { %3578 = vmatmul.mubr.msk.f32.gmra.mrb[40].mxu1 %vm572_vm3, %v5321_v40 }
  0x93   : > { %3628 = vmatmul.mubr.msk.f32.gmra.mrb[20].mxu0 %vm572_vm3, %v5240_v29  ;;  %842 = vmatprep.mubr.f32.mxu1 %v4796_v35 }
  0x94   : > { %1227 = vmatprep.mubr.f32.mxu0 %v4796_v35 }
  0x96   : > { %3579 = vmatmul.mubr.msk.f32.gmra.mrb[42].mxu1 %vm572_vm3, %v5330_v41 }
  0x97   : > { %3629 = vmatmul.mubr.msk.f32.gmra.mrb[22].mxu0 %vm572_vm3, %v5249_v30  ;;  %848 = vmatprep.mubr.f32.mxu1 %v4796_v35 }
  0x98   : > { %1233 = vmatprep.mubr.f32.mxu0 %v4796_v35 }
  0x9a   : > { %3580 = vmatmul.mubr.msk.f32.gmra.mrb[44].mxu1 %vm572_vm3, %v5339_v42 }
  0x9b   : > { %3630 = vmatmul.mubr.msk.f32.gmra.mrb[24].mxu0 %vm572_vm3, %v5258_v31  ;;  %854 = vmatprep.mubr.f32.mxu1 %v4796_v35 }
  0x9c   : > { %1239 = vmatprep.mubr.f32.mxu0 %v4796_v35 }
  0x9e   : > { %3581 = vmatmul.mubr.msk.f32.gmra.mrb[46].mxu1 %vm572_vm3, %v5348_v43 }
  0x9f   : > { %3631 = vmatmul.mubr.msk.f32.gmra.mrb[26].mxu0 %vm572_vm3, %v5267_v32  ;;  %1006 = vmatprep.mubr.f32.mxu1 %v4796_v35 }
  0xa0   : > { %1245 = vmatprep.mubr.f32.mxu0 %v4796_v35 }
  0xa2   : > { %3596 = vmatmul.mubr.msk.f32.vlgmr.msra.gmra.mrb[24].mxu1 %vm572_vm3, %v5240_v29 }
  0xa3   : > { %3632 = vmatmul.mubr.msk.f32.gmra.mrb[28].mxu0 %vm572_vm3, %v5276_v33  ;;  %1012 = vmatprep.mubr.f32.mxu1 %v4796_v35 }
  0xa4   : > { %1251 = vmatprep.mubr.f32.mxu0 %v4796_v35 }
  0xa6   : > { %3597 = vmatmul.mubr.msk.f32.gmra.mrb[26].mxu1 %vm572_vm3, %v5249_v30 }
  0xa7   : > { %3633 = vmatmul.mubr.msk.f32.gmra.mrb[30].mxu0 %vm572_vm3, %v5285_v34  ;;  %1018 = vmatprep.mubr.f32.mxu1 %v4796_v35 }
  0xa8   : > { %1257 = vmatprep.mubr.f32.mxu0 %v4796_v35 }
  0xaa   : > { %3598 = vmatmul.mubr.msk.f32.gmra.mrb[28].mxu1 %vm572_vm3, %v5258_v31 }
  0xab   : > { %3634 = vmatmul.mubr.msk.f32.gmra.mrb[32].mxu0 %vm572_vm3, %v5294_v36  ;;  %1024 = vmatprep.mubr.f32.mxu1 %v4796_v35 }
  0xac   : > { %1263 = vmatprep.mubr.f32.mxu0 %v4796_v35 }
  0xae   : > { %3599 = vmatmul.mubr.msk.f32.gmra.mrb[30].mxu1 %vm572_vm3, %v5267_v32 }
  0xaf   : > { %3635 = vmatmul.mubr.msk.f32.gmra.mrb[34].mxu0 %vm572_vm3, %v5303_v38  ;;  %1030 = vmatprep.mubr.f32.mxu1 %v4796_v35 }
  0xb0   : > { %1269 = vmatprep.mubr.f32.mxu0 %v4796_v35 }
  0xb2   : > { %3600 = vmatmul.mubr.msk.f32.gmra.mrb[32].mxu1 %vm572_vm3, %v5276_v33 }
  0xb3   : > { %3636 = vmatmul.mubr.msk.f32.gmra.mrb[36].mxu0 %vm572_vm3, %v5312_v39  ;;  %1036 = vmatprep.mubr.f32.mxu1 %v4796_v35 }
  0xb4   : > { %1275 = vmatprep.mubr.f32.mxu0 %v4796_v35 }
  0xb6   : > { %3601 = vmatmul.mubr.msk.f32.gmra.mrb[34].mxu1 %vm572_vm3, %v5285_v34 }
  0xb7   : > { %3637 = vmatmul.mubr.msk.f32.gmra.mrb[38].mxu0 %vm572_vm3, %v5321_v40  ;;  %1042 = vmatprep.mubr.f32.mxu1 %v4796_v35 }
  0xb8   : > { %1281 = vmatprep.mubr.f32.mxu0 %v4796_v35 }
  0xba   : > { %3602 = vmatmul.mubr.msk.f32.gmra.mrb[36].mxu1 %vm572_vm3, %v5294_v36 }
  0xbb   : > { %3638 = vmatmul.mubr.msk.f32.gmra.mrb[40].mxu0 %vm572_vm3, %v5330_v41  ;;  %1048 = vmatprep.mubr.f32.mxu1 %v4796_v35 }
  0xbc   : > { %1287 = vmatprep.mubr.f32.mxu0 %v4796_v35 }
  0xbe   : > { %3603 = vmatmul.mubr.msk.f32.gmra.mrb[38].mxu1 %vm572_vm3, %v5303_v38 }
  0xbf   : > { %3639 = vmatmul.mubr.msk.f32.gmra.mrb[42].mxu0 %vm572_vm3, %v5339_v42  ;;  %1054 = vmatprep.mubr.f32.mxu1 %v4796_v35 }
  0xc0   : > { %1293 = vmatprep.mubr.f32.mxu0 %v4796_v35 }
  0xc2   : > { %3604 = vmatmul.mubr.msk.f32.gmra.mrb[40].mxu1 %vm572_vm3, %v5312_v39 }
  0xc3   : > { %3640 = vmatmul.mubr.msk.f32.gmra.mrb[44].mxu0 %vm572_vm3, %v5348_v43  ;;  %1060 = vmatprep.mubr.f32.mxu1 %v4796_v35 }
  0xc4   : > { %1299 = vmatprep.mubr.f32.mxu0 %v4796_v35 }
  0xc6   : > { %3605 = vmatmul.mubr.msk.f32.gmra.mrb[42].mxu1 %vm572_vm3, %v5321_v40 }
  0xc7   : > { %3641 = vmatmul.mubr.msk.f32.gmra.mrb[46].mxu0 %vm572_vm3, %v5393_v44  ;;  %1066 = vmatprep.mubr.f32.mxu1 %v4796_v35 }
  0xc8   : > { %1436 = vmatprep.mubr.f32.mxu0 %v4796_v35 }
  0xca   : > { %3606 = vmatmul.mubr.msk.f32.gmra.mrb[44].mxu1 %vm572_vm3, %v5330_v41 }
  0xcb   : > { %3652 = vmatmul.mubr.msk.f32.vlgmr.msra.gmra.mrb[0].mxu0 %vm572_vm3, %v5090_v1  ;;  %1072 = vmatprep.mubr.f32.mxu1 %v4796_v35 }
  0xcc   : > { %4286 = vmatpush1.bf16.msra.mxu0 %v4285_v49  ;;  %1442 = vmatprep.mubr.f32.mxu0 %v4796_v35 }
  0xcd   : > { %4289 = vmatprep.subr.msk.bf16.mxu0 %vm5006_vm2, %v4287_v50 }
  0xce   : > { %3607 = vmatmul.mubr.msk.f32.gmra.mrb[46].mxu1 %vm572_vm3, %v5339_v42 }
  0xcf   : > { %3653 = vmatmul.mubr.msk.f32.gmra.mrb[2].mxu0 %vm572_vm3, %v5108_v8 }
  0xd0   : > { %1448 = vmatprep.mubr.f32.mxu0 %v4796_v35  ;;  %4292 = vmatpush1.bf16.msk.msra.mxu0 %vm5006_vm2, %v4290_v53 }
  0xd3   : > { %3654 = vmatmul.mubr.msk.f32.gmra.mrb[4].mxu0 %vm572_vm3, %v5119_v10 }
  0xd4   : > { %1454 = vmatprep.mubr.f32.mxu0 %v4796_v35 }
  0xd7   : > { %3655 = vmatmul.mubr.msk.f32.gmra.mrb[6].mxu0 %vm572_vm3, %v5131_v11 }
  0xd8   : > { %1460 = vmatprep.mubr.f32.mxu0 %v4796_v35 }
  0xdb   : > { %3656 = vmatmul.mubr.msk.f32.gmra.mrb[8].mxu0 %vm572_vm3, %v5143_v12 }
  0xdc   : > { %1466 = vmatprep.mubr.f32.mxu0 %v4796_v35 }
  0xdf   : > { %3657 = vmatmul.mubr.msk.f32.gmra.mrb[10].mxu0 %vm572_vm3, %v5152_v13 }
  0xe0   : > { %1472 = vmatprep.mubr.f32.mxu0 %v4796_v35 }
  0xe3   : > { %3658 = vmatmul.mubr.msk.f32.gmra.mrb[12].mxu0 %vm572_vm3, %v5161_v14 }
  0xe4   : > { %1478 = vmatprep.mubr.f32.mxu0 %v4796_v35 }
  0xe7   : > { %3659 = vmatmul.mubr.msk.f32.gmra.mrb[14].mxu0 %vm572_vm3, %v5170_v15 }
  0xe8   : > { %1484 = vmatprep.mubr.f32.mxu0 %v4796_v35 }
  0xeb   : > { %3660 = vmatmul.mubr.msk.f32.gmra.mrb[16].mxu0 %vm572_vm3, %v5179_v16 }
  0xec   : > { %1490 = vmatprep.mubr.f32.mxu0 %v4796_v35 }
  0xef   : > { %3661 = vmatmul.mubr.msk.f32.gmra.mrb[18].mxu0 %vm572_vm3, %v5240_v29 }
  0xf0   : > { %1496 = vmatprep.mubr.f32.mxu0 %v4796_v35 }
  0xf3   : > { %3662 = vmatmul.mubr.msk.f32.gmra.mrb[20].mxu0 %vm572_vm3, %v5249_v30 }
  0xf4   : > { %1502 = vmatprep.mubr.f32.mxu0 %v4796_v35 }
  0xf7   : > { %3663 = vmatmul.mubr.msk.f32.gmra.mrb[22].mxu0 %vm572_vm3, %v5258_v31 }
  0xf8   : > { %1508 = vmatprep.mubr.f32.mxu0 %v4796_v35 }
  0xfb   : > { %3664 = vmatmul.mubr.msk.f32.gmra.mrb[24].mxu0 %vm572_vm3, %v5267_v32 }
  0xfc   : > { %1514 = vmatprep.mubr.f32.mxu0 %v4796_v35 }
  0xff   : > { %3665 = vmatmul.mubr.msk.f32.gmra.mrb[26].mxu0 %vm572_vm3, %v5276_v33 }
 0x100   : > { %1520 = vmatprep.mubr.f32.mxu0 %v4796_v35 }
 0x103   : > { %3666 = vmatmul.mubr.msk.f32.gmra.mrb[28].mxu0 %vm572_vm3, %v5285_v34 }
 0x104   : > { %1526 = vmatprep.mubr.f32.mxu0 %v4796_v35 }
 0x107   : > { %3667 = vmatmul.mubr.msk.f32.gmra.mrb[30].mxu0 %vm572_vm3, %v5294_v36 }
 0x108   : > { %1532 = vmatprep.mubr.f32.mxu0 %v4796_v35 }
 0x10b   : > { %3668 = vmatmul.mubr.msk.f32.gmra.mrb[32].mxu0 %vm572_vm3, %v5303_v38 }
 0x10c   : > { %1538 = vmatprep.mubr.f32.mxu0 %v4796_v35 }
 0x10f   : > { %3669 = vmatmul.mubr.msk.f32.gmra.mrb[34].mxu0 %vm572_vm3, %v5312_v39 }
 0x110   : > { %1544 = vmatprep.mubr.f32.mxu0 %v4796_v35 }
 0x113   : > { %3670 = vmatmul.mubr.msk.f32.gmra.mrb[36].mxu0 %vm572_vm3, %v5321_v40 }
 0x114   : > { %1550 = vmatprep.mubr.f32.mxu0 %v4796_v35 }
 0x115   : > { %v5503_v37 = vpop.f32.mrb[0].mxu1 }
 0x116   : > { %v5505_v54 = vpop.f32.mrb[1].mxu1 }
 0x117   : > { %3671 = vmatmul.mubr.msk.f32.gmra.mrb[38].mxu0 %vm572_vm3, %v5330_v41 }
 0x118   : > { %1556 = vmatprep.mubr.f32.mxu0 %v4796_v35 }
 0x119   : > { %v5513_v56 = vpop.f32.mrb[2].mxu1 }
 0x11a   : > { %v5515_v57 = vpop.f32.mrb[3].mxu1 }
 0x11b   : > { %3672 = vmatmul.mubr.msk.f32.gmra.mrb[40].mxu0 %vm572_vm3, %v5339_v42 }
 0x11c   : > { %1562 = vmatprep.mubr.f32.mxu0 %v4796_v35 }
 0x11d   : > { %v5520_v58 = vpop.f32.mrb[4].mxu1 }
 0x11e   : > { %v5522_v59 = vpop.f32.mrb[5].mxu1 }
 0x11f   : > { %3673 = vmatmul.mubr.msk.f32.gmra.mrb[42].mxu0 %vm572_vm3, %v5348_v43 }
 0x120   : > { %1568 = vmatprep.mubr.f32.mxu0 %v4796_v35 }
 0x121   : > { %v5527_v60 = vpop.f32.mrb[6].mxu1 }
 0x122   : > { %v5529_v61 = vpop.f32.mrb[7].mxu1 }
 0x123   : > { %3674 = vmatmul.mubr.msk.f32.gmra.mrb[44].mxu0 %vm572_vm3, %v5393_v44 }
 0x124   : > { %1574 = vmatprep.mubr.f32.mxu0 %v4796_v35 }
 0x125   : > { %v5534_v62 = vpop.f32.mrb[8].mxu1 }
 0x126   : > { %v5536_v63 = vpop.f32.mrb[9].mxu1 }
 0x127   : > { %3675 = vmatmul.mubr.msk.f32.gmra.mrb[46].mxu0 %vm572_vm3, %v5511_v55 }
 0x128   : > { %1711 = vmatprep.mubr.f32.mxu0 %v4796_v35 }
 0x129   : > { %v5541_v0 = vpop.f32.mrb[10].mxu1 }
 0x12a   : > { %v5543_v1 = vpop.f32.mrb[11].mxu1 }
 0x12b   : > { %3686 = vmatmul.mubr.msk.f32.vlgmr.msra.gmra.mrb[0].mxu0 %vm572_vm3, %v5108_v8 }
 0x12c   : > { %1717 = vmatprep.mubr.f32.mxu0 %v4796_v35 }
 0x12d   : > { %v5548_v2 = vpop.f32.mrb[12].mxu1 }
 0x12e   : > { %v5550_v3 = vpop.f32.mrb[13].mxu1 }
 0x12f   : > { %3687 = vmatmul.mubr.msk.f32.gmra.mrb[2].mxu0 %vm572_vm3, %v5119_v10 }
 0x130   : > { %1723 = vmatprep.mubr.f32.mxu0 %v4796_v35 }
 0x131   : > { %v5555_v4 = vpop.f32.mrb[14].mxu1 }
 0x132   : > { %v5557_v5 = vpop.f32.mrb[15].mxu1 }
 0x133   : > { %3688 = vmatmul.mubr.msk.f32.gmra.mrb[4].mxu0 %vm572_vm3, %v5131_v11 }
 0x134   : > { %1729 = vmatprep.mubr.f32.mxu0 %v4796_v35 }
 0x135   : > { %v5562_v6 = vpop.f32.mrb[16].mxu1 }
 0x136   : > { %v5564_v7 = vpop.f32.mrb[17].mxu1 }
 0x137   : > { %3689 = vmatmul.mubr.msk.f32.gmra.mrb[6].mxu0 %vm572_vm3, %v5143_v12 }
 0x138   : > { %1735 = vmatprep.mubr.f32.mxu0 %v4796_v35 }
 0x139   : > { %v5569_v8 = vpop.f32.mrb[18].mxu1 }
 0x13a   : > { %v5571_v9 = vpop.f32.mrb[19].mxu1 }
 0x13b   : > { %3690 = vmatmul.mubr.msk.f32.gmra.mrb[8].mxu0 %vm572_vm3, %v5152_v13 }
 0x13c   : > { %1741 = vmatprep.mubr.f32.mxu0 %v4796_v35 }
 0x13d   : > { %v5576_v10 = vpop.f32.mrb[20].mxu1 }
 0x13e   : > { %v5578_v11 = vpop.f32.mrb[21].mxu1 }
 0x13f   : > { %3691 = vmatmul.mubr.msk.f32.gmra.mrb[10].mxu0 %vm572_vm3, %v5161_v14 }
 0x140   : > { %1747 = vmatprep.mubr.f32.mxu0 %v4796_v35 }
 0x141   : > { %v5583_v12 = vpop.f32.mrb[22].mxu1 }
 0x142   : > { %v5585_v13 = vpop.f32.mrb[23].mxu1 }
 0x143   : > { %3692 = vmatmul.mubr.msk.f32.gmra.mrb[12].mxu0 %vm572_vm3, %v5170_v15 }
 0x144   : > { %1753 = vmatprep.mubr.f32.mxu0 %v4796_v35 }
 0x147   : > { %3693 = vmatmul.mubr.msk.f32.gmra.mrb[14].mxu0 %vm572_vm3, %v5179_v16  ;;  %v554_v16 = vld [vmem:[%s5047_s21 + $0xd8] sm:$0xff]  ;;  %s4798_s21 = smov 56  }
 0x148   : > { %1759 = vmatprep.mubr.f32.mxu0 %v4796_v35 }
 0x14b   : > { %3694 = vmatmul.mubr.msk.f32.gmra.mrb[16].mxu0 %vm572_vm3, %v5240_v29 }
 0x14c   : > { %1765 = vmatprep.mubr.f32.mxu0 %v4796_v35 }
 0x14f   : > { %3695 = vmatmul.mubr.msk.f32.gmra.mrb[18].mxu0 %vm572_vm3, %v5249_v30 }
 0x150   : > { %1771 = vmatprep.mubr.f32.mxu0 %v4796_v35 }
 0x153   : > { %3696 = vmatmul.mubr.msk.f32.gmra.mrb[20].mxu0 %vm572_vm3, %v5258_v31 }
 0x154   : > { %1777 = vmatprep.mubr.f32.mxu0 %v4796_v35 }
 0x157   : > { %3697 = vmatmul.mubr.msk.f32.gmra.mrb[22].mxu0 %vm572_vm3, %v5267_v32 }
 0x158   : > { %1783 = vmatprep.mubr.f32.mxu0 %v4796_v35 }
 0x15b   : > { %3698 = vmatmul.mubr.msk.f32.gmra.mrb[24].mxu0 %vm572_vm3, %v5276_v33 }
 0x15c   : > { %1789 = vmatprep.mubr.f32.mxu0 %v4796_v35 }
 0x15f   : > { %3699 = vmatmul.mubr.msk.f32.gmra.mrb[26].mxu0 %vm572_vm3, %v5285_v34 }
 0x160   : > { %1795 = vmatprep.mubr.f32.mxu0 %v4796_v35 }
 0x163   : > { %3700 = vmatmul.mubr.msk.f32.gmra.mrb[28].mxu0 %vm572_vm3, %v5294_v36 }
 0x164   : > { %1801 = vmatprep.mubr.f32.mxu0 %v4796_v35 }
 0x167   : > { %3701 = vmatmul.mubr.msk.f32.gmra.mrb[30].mxu0 %vm572_vm3, %v5303_v38 }
 0x168   : > { %1807 = vmatprep.mubr.f32.mxu0 %v4796_v35 }
 0x16b   : > { %3702 = vmatmul.mubr.msk.f32.gmra.mrb[32].mxu0 %vm572_vm3, %v5312_v39 }
 0x16c   : > { %1813 = vmatprep.mubr.f32.mxu0 %v4796_v35 }
 0x16f   : > { %3703 = vmatmul.mubr.msk.f32.gmra.mrb[34].mxu0 %vm572_vm3, %v5321_v40 }
 0x170   : > { %1819 = vmatprep.mubr.f32.mxu0 %v4796_v35 }
 0x173   : > { %3704 = vmatmul.mubr.msk.f32.gmra.mrb[36].mxu0 %vm572_vm3, %v5330_v41  ;;  %v1906_v41 = vlaneseq }
 0x174   : > { %1825 = vmatprep.mubr.f32.mxu0 %v4796_v35 }
 0x175   : > { %v5626_v14 = vpop.f32.mrb[24].mxu1 }
 0x176   : > { %v5628_v15 = vpop.f32.mrb[25].mxu1 }
 0x177   : > { %3705 = vmatmul.mubr.msk.f32.gmra.mrb[38].mxu0 %vm572_vm3, %v5339_v42  ;;  %v1907_v42 = vshrl.u32 %v1906_v41, 7 }
 0x178   : > { %1831 = vmatprep.mubr.f32.mxu0 %v4796_v35 }
 0x179   : > { %v5634_v17 = vpop.f32.mrb[26].mxu1  ;;  %v1912_v45 = vsub.s32 1, %v1907_v42 }
 0x17a   : > { %v5636_v18 = vpop.f32.mrb[27].mxu1 }
 0x17b   : > { %3706 = vmatmul.mubr.msk.f32.gmra.mrb[40].mxu0 %vm572_vm3, %v5348_v43  ;;  %v1908_v43 = vsub.s32 0, %v1907_v42 }
 0x17c   : > { %1837 = vmatprep.mubr.f32.mxu0 %v4796_v35 }
 0x17d   : > { %v5639_v19 = vpop.f32.mrb[28].mxu1 }
 0x17e   : > { %v5641_v20 = vpop.f32.mrb[29].mxu1 }
 0x17f   : > { %3707 = vmatmul.mubr.msk.f32.gmra.mrb[42].mxu0 %vm572_vm3, %v5393_v44  ;;  %v1904_v44 = vld [vmem:[%s6549_s2] sm:$0x3] }
 0x180   : > { %1843 = vmatprep.mubr.f32.mxu0 %v4796_v35  ;;  %v5682_v46 = vrot.slane %v1904_v44, %v1908_v43  ;;  %v5684_v48 = vrot.slane %v1904_v44, %v1912_v45 }
 0x181   : > { %v5643_v21 = vpop.f32.mrb[30].mxu1 }
 0x182   : > { %v5645_v22 = vpop.f32.mrb[31].mxu1 }
 0x183   : > { %3708 = vmatmul.mubr.msk.f32.gmra.mrb[44].mxu0 %vm572_vm3, %v5511_v55  ;;  %v4293_v55 = vpack.c.bf16 %v3711_v52, %v3710_v51 }
 0x184   : > { %1849 = vmatprep.mubr.f32.mxu0 %v4796_v35 }
 0x185   : > { %v5647_v23 = vpop.f32.mrb[32].mxu1  ;;  %4294 = vmatprep.subr.bf16.mxu1 %v4293_v55 }
 0x186   : > { %v5649_v24 = vpop.f32.mrb[33].mxu1  ;;  %4296 = vmatpush3.bf16.msra.mxu1 %v4293_v55  ;;  %v3715_v55 = vld [vmem:[%s6550_s3 + $0x70] sm:$0xff] }
 0x187   : > { %3709 = vmatmul.mubr.msk.f32.gmra.mrb[46].mxu0 %vm572_vm3, %v554_v16 }
 0x189   : > { %v5651_v25 = vpop.f32.mrb[34].mxu1 }
 0x18a   : > { %v5653_v26 = vpop.f32.mrb[35].mxu1 }
 0x18d   : > { %v5655_v27 = vpop.f32.mrb[36].mxu1 }
 0x18e   : > { %v5657_v28 = vpop.f32.mrb[37].mxu1 }
 0x191   : > { %v5659_v29 = vpop.f32.mrb[38].mxu1 }
 0x192   : > { %v5661_v30 = vpop.f32.mrb[39].mxu1 }
 0x195   : > { %v5663_v31 = vpop.f32.mrb[40].mxu1 }
 0x196   : > { %v5665_v32 = vpop.f32.mrb[41].mxu1 }
 0x199   : > { %v5667_v33 = vpop.f32.mrb[42].mxu1 }
 0x19a   : > { %v5669_v34 = vpop.f32.mrb[43].mxu1 }
 0x19d   : > { %v5671_v36 = vpop.f32.mrb[44].mxu1 }
 0x19e   : > { %v5673_v38 = vpop.f32.mrb[45].mxu1 }
 0x1a1   : > { %v5675_v39 = vpop.f32.mrb[46].mxu1 }
 0x1a2   : > { %v5677_v40 = vpop.f32.mrb[47].mxu1 }
 0x1fe   : > { %v1713_v47 = vpop.f32.mrb[0].mxu0 }
 0x1ff   : > { %v4461_v49 = vadd.f32 %v1713_v47, %v5503_v37  ;;  %v1715_v50 = vpop.f32.mrb[1].mxu0 }
 0x200   : > { %v4462_v53 = vadd.f32 %v1715_v50, %v5505_v54  ;;  %v3712_v54 = vld [vmem:[%s6550_s3 + $0x58] sm:$0xff] }
 0x201   : > { %v5695_v16 = vadd.f32 %v4461_v49, %v5682_v46  ;;  %v3713_v49 = vld [vmem:[%s6550_s3 + $0x60] sm:$0xff] }
 0x202   : > { %v1719_v41 = vpop.f32.mrb[2].mxu0  ;;  %v1917_v42 = vadd.f32 %v4462_v53, %v5684_v48  ;;  %v3714_v53 = vld [vmem:[%s6550_s3 + $0x68] sm:$0xff] }
 0x203   : > { %v5699_v37 = vadd.f32 %v1719_v41, %v5513_v56  ;;  %v1721_v43 = vpop.f32.mrb[3].mxu0  ;;  %v1964_v44 = vmax.f32 %v5695_v16, 0.0  ;;  %v4297_v56 = vpack.c.bf16 %v3713_v49, %v3712_v54  ;;  %v3739_v16 = vld [vmem:[%s6550_s3 + $0xb0] sm:$0xff] }
 0x204   : > { %v5703_v45 = vadd.f32 %v1721_v43, %v5515_v57  ;;  %v1965_v47 = vmax.f32 %v1917_v42, 0.0  ;;  %v4301_v42 = vpack.c.bf16 %v3715_v55, %v3714_v53 }
 0x205   : > { %2060 = vrot.lane.b32.xlu0 %v1964_v44, %s4798_s21  ;;  %4298 = vmatprep.subr.bf16.mxu1 %v4297_v56 }
 0x206   : > { %2062 = vrot.lane.b32.xlu1 %v1965_v47, %s4798_s21  ;;  %v1725_v50 = vpop.f32.mrb[4].mxu0  ;;  %4300 = vmatpush3.bf16.msra.mxu1 %v4297_v56  ;;  %v3716_v56 = vld [vmem:[%s6550_s3 + $0x78] sm:$0xff] }
 0x207   : > { %v4465_v57 = vadd.f32 %v1725_v50, %v5520_v58  ;;  %v1727_v51 = vpop.f32.mrb[5].mxu0  ;;  %4302 = vmatprep.subr.bf16.mxu1 %v4301_v42  ;;  %v3717_v50 = vld [vmem:[%s6550_s3 + $0x80] sm:$0xff] }
 0x208   : > { %v4466_v52 = vadd.f32 %v1727_v51, %v5522_v59 }
 0x209   : > { %v5724_v41 = vadd.f32 %v4465_v57, %v5682_v46 }
 0x20a   : > { %v1731_v43 = vpop.f32.mrb[6].mxu0  ;;  %v1921_v47 = vadd.f32 %v4466_v52, %v5684_v48  ;;  %4304 = vmatpush3.bf16.msra.mxu1 %v4301_v42 }
 0x20b   : > { %v1968_v58 = vmax.f32 %v5724_v41, 0.0  ;;  %v4467_v59 = vadd.f32 %v1731_v43, %v5527_v60  ;;  %v1733_v54 = vpop.f32.mrb[7].mxu0  ;;  %v4305_v60 = vpack.c.bf16 %v3717_v50, %v3716_v56  ;;  %v2243_v41 = vld [vmem:[%s6550_s3 + $0x10] sm:$0xff] }
 0x20c   : > { %v4468_v49 = vadd.f32 %v1733_v54, %v5529_v61  ;;  %v1969_v52 = vmax.f32 %v1921_v47, 0.0  ;;  %v3718_v54 = vld [vmem:[%s6550_s3 + $0x88] sm:$0xff] }
 0x20d   : > { %v5737_v57 = vadd.f32 %v4467_v59, %v5682_v46  ;;  %2068 = vrot.lane.b32.xlu0 %v1968_v58, %s4798_s21  ;;  %4306 = vmatprep.subr.bf16.mxu1 %v4305_v60 }
 0x20e   : > { %v1737_v51 = vpop.f32.mrb[8].mxu0  ;;  %v1923_v53 = vadd.f32 %v4468_v49, %v5684_v48  ;;  %4308 = vmatpush3.bf16.msra.mxu1 %v4305_v60 }
 0x20f   : > { %v1970_v61 = vmax.f32 %v5737_v57, 0.0  ;;  %v4469_v55 = vadd.f32 %v1737_v51, %v5534_v62  ;;  %v1739_v42 = vpop.f32.mrb[9].mxu0  ;;  %3979 = vmatprep.subr.mxu1 %v3718_v54 }
 0x210   : > { %v4470_v43 = vadd.f32 %v1739_v42, %v5536_v63  ;;  %v1971_v62 = vmax.f32 %v1923_v53, 0.0 }
 0x211   : > { %v5747_v59 = vadd.f32 %v4469_v55, %v5682_v46  ;;  %2070 = vrot.lane.b32.xlu0 %v1969_v52, %s4798_s21  ;;  %2072 = vrot.lane.b32.xlu1 %v1970_v61, %s4798_s21 }
 0x212   : > { %v1743_v47 = vpop.f32.mrb[10].mxu0  ;;  %v1925_v63 = vadd.f32 %v4470_v43, %v5684_v48  ;;  %3980 = vmatpush3.msra.mxu1 %v3718_v54 }
 0x213   : > { %v1972_v49 = vmax.f32 %v5747_v59, 0.0  ;;  %v4471_v56 = vadd.f32 %v1743_v47, %v5541_v0  ;;  %v1745_v50 = vpop.f32.mrb[11].mxu0 }
 0x214   : > { %v4472_v60 = vadd.f32 %v1745_v50, %v5543_v1  ;;  %v1973_v53 = vmax.f32 %v1925_v63, 0.0 }
 0x215   : > { %v5761_v51 = vadd.f32 %v4471_v56, %v5682_v46  ;;  %2074 = vrot.lane.b32.xlu1 %v1971_v62, %s4798_s21  ;;  %2076 = vrot.lane.b32.xlu0 %v1972_v49, %s4798_s21 }
 0x216   : > { %v1749_v52 = vpop.f32.mrb[12].mxu0  ;;  %v1927_v0 = vadd.f32 %v4472_v60, %v5684_v48 }
 0x217   : > { %v1974_v55 = vmax.f32 %v5761_v51, 0.0  ;;  %v4473_v42 = vadd.f32 %v1749_v52, %v5548_v2  ;;  %v1751_v43 = vpop.f32.mrb[13].mxu0 }
 0x218   : > { %v4474_v1 = vadd.f32 %v1751_v43, %v5550_v3  ;;  %v1975_v62 = vmax.f32 %v1927_v0, 0.0 }
 0x219   : > { %v5772_v47 = vadd.f32 %v4473_v42, %v5682_v46  ;;  %2078 = vrot.lane.b32.xlu1 %v1973_v53, %s4798_s21  ;;  %2080 = vrot.lane.b32.xlu0 %v1974_v55, %s4798_s21 }
 0x21a   : > { %v1755_v54 = vpop.f32.mrb[14].mxu0  ;;  %v1929_v56 = vadd.f32 %v4474_v1, %v5684_v48 }
 0x21b   : > { %v1976_v63 = vmax.f32 %v5772_v47, 0.0  ;;  %v4475_v2 = vadd.f32 %v1755_v54, %v5555_v4  ;;  %v1757_v50 = vpop.f32.mrb[15].mxu0 }
 0x21c   : > { %v4476_v3 = vadd.f32 %v1757_v50, %v5557_v5  ;;  %v1977_v53 = vmax.f32 %v1929_v56, 0.0 }
 0x21d   : > { %v5783_v60 = vadd.f32 %v4475_v2, %v5682_v46  ;;  %2082 = vrot.lane.b32.xlu1 %v1975_v62, %s4798_s21  ;;  %2084 = vrot.lane.b32.xlu0 %v1976_v63, %s4798_s21 }
 0x21e   : > { %v1761_v52 = vpop.f32.mrb[16].mxu0  ;;  %v1931_v42 = vadd.f32 %v4476_v3, %v5684_v48 }
 0x21f   : > { %v1978_v0 = vmax.f32 %v5783_v60, 0.0  ;;  %v4477_v4 = vadd.f32 %v1761_v52, %v5562_v6  ;;  %v1763_v43 = vpop.f32.mrb[17].mxu0  ;;  %v3735_v60 = vld [vmem:[%s6550_s3 + $0x90] sm:$0xff] }
 0x220   : > { %v4478_v5 = vadd.f32 %v1763_v43, %v5564_v7  ;;  %v1979_v62 = vmax.f32 %v1931_v42, 0.0 }
 0x221   : > { %v5794_v1 = vadd.f32 %v4477_v4, %v5682_v46  ;;  %2086 = vrot.lane.b32.xlu1 %v1977_v53, %s4798_s21  ;;  %2088 = vrot.lane.b32.xlu0 %v1978_v0, %s4798_s21 }
 0x222   : > { %v1767_v54 = vpop.f32.mrb[18].mxu0  ;;  %v1933_v2 = vadd.f32 %v4478_v5, %v5684_v48 }
 0x223   : > { %v1980_v56 = vmax.f32 %v5794_v1, 0.0  ;;  %v4479_v6 = vadd.f32 %v1767_v54, %v5569_v8  ;;  %v1769_v50 = vpop.f32.mrb[19].mxu0 }
 0x224   : > { %v4480_v7 = vadd.f32 %v1769_v50, %v5571_v9  ;;  %v1981_v53 = vmax.f32 %v1933_v2, 0.0 }
 0x225   : > { %v5805_v3 = vadd.f32 %v4479_v6, %v5682_v46  ;;  %2090 = vrot.lane.b32.xlu1 %v1979_v62, %s4798_s21  ;;  %2092 = vrot.lane.b32.xlu0 %v1980_v56, %s4798_s21 }
 0x226   : > { %v1773_v52 = vpop.f32.mrb[20].mxu0  ;;  %v1935_v4 = vadd.f32 %v4480_v7, %v5684_v48 }
 0x227   : > { %v1982_v42 = vmax.f32 %v5805_v3, 0.0  ;;  %v4481_v8 = vadd.f32 %v1773_v52, %v5576_v10  ;;  %v1775_v43 = vpop.f32.mrb[21].mxu0 }
 0x228   : > { %v4482_v9 = vadd.f32 %v1775_v43, %v5578_v11  ;;  %v1983_v62 = vmax.f32 %v1935_v4, 0.0 }
 0x229   : > { %v5816_v5 = vadd.f32 %v4481_v8, %v5682_v46  ;;  %2094 = vrot.lane.b32.xlu1 %v1981_v53, %s4798_s21  ;;  %2096 = vrot.lane.b32.xlu0 %v1982_v42, %s4798_s21 }
 0x22a   : > { %v1779_v54 = vpop.f32.mrb[22].mxu0  ;;  %v1937_v6 = vadd.f32 %v4482_v9, %v5684_v48 }
 0x22b   : > { %v1984_v2 = vmax.f32 %v5816_v5, 0.0  ;;  %v4483_v10 = vadd.f32 %v1779_v54, %v5583_v12  ;;  %v1781_v50 = vpop.f32.mrb[23].mxu0 }
 0x22c   : > { %v4484_v11 = vadd.f32 %v1781_v50, %v5585_v13  ;;  %v1985_v53 = vmax.f32 %v1937_v6, 0.0 }
 0x22d   : > { %v5827_v7 = vadd.f32 %v4483_v10, %v5682_v46  ;;  %2098 = vrot.lane.b32.xlu1 %v1983_v62, %s4798_s21  ;;  %2100 = vrot.lane.b32.xlu0 %v1984_v2, %s4798_s21 }
 0x22e   : > { %v1785_v52 = vpop.f32.mrb[24].mxu0  ;;  %v1939_v8 = vadd.f32 %v4484_v11, %v5684_v48  ;;  %v2241_v11 = vld [vmem:[%s6550_s3] sm:$0xff] }
 0x22f   : > { %v1986_v4 = vmax.f32 %v5827_v7, 0.0  ;;  %v4485_v12 = vadd.f32 %v1785_v52, %v5626_v14  ;;  %v1787_v43 = vpop.f32.mrb[25].mxu0  ;;  %v2242_v52 = vld [vmem:[%s6550_s3 + $0x8] sm:$0xff] }
 0x230   : > { %v4486_v13 = vadd.f32 %v1787_v43, %v5628_v15  ;;  %v1987_v62 = vmax.f32 %v1939_v8, 0.0 }
 0x231   : > { %v5838_v9 = vadd.f32 %v4485_v12, %v5682_v46  ;;  %2102 = vrot.lane.b32.xlu1 %v1985_v53, %s4798_s21  ;;  %2104 = vrot.lane.b32.xlu0 %v1986_v4, %s4798_s21 }
 0x232   : > { %v1791_v54 = vpop.f32.mrb[26].mxu0  ;;  %v1941_v10 = vadd.f32 %v4486_v13, %v5684_v48 }
 0x233   : > { %v1988_v6 = vmax.f32 %v5838_v9, 0.0  ;;  %v4487_v14 = vadd.f32 %v1791_v54, %v5634_v17  ;;  %v1793_v50 = vpop.f32.mrb[27].mxu0  ;;  %v5861_v17 = vpack.c.bf16 %v2242_v52, %v2241_v11 }
 0x234   : > { %v4488_v15 = vadd.f32 %v1793_v50, %v5636_v18  ;;  %v1989_v8 = vmax.f32 %v1941_v10, 0.0 }
 0x235   : > { %v5855_v53 = vadd.f32 %v4487_v14, %v5682_v46  ;;  %2106 = vrot.lane.b32.xlu1 %v1987_v62, %s4798_s21  ;;  %2108 = vrot.lane.b32.xlu0 %v1988_v6, %s4798_s21 }
 0x236   : > { %v1797_v18 = vpop.f32.mrb[28].mxu0  ;;  %v1943_v43 = vadd.f32 %v4488_v15, %v5684_v48  ;;  %4310 = vmatprep.subr.bf16.mxu1 %v5861_v17 }
 0x237   : > { %v1990_v12 = vmax.f32 %v5855_v53, 0.0  ;;  %v4489_v13 = vadd.f32 %v1797_v18, %v5639_v19  ;;  %v1799_v54 = vpop.f32.mrb[29].mxu0 }
 0x238   : > { %v4490_v14 = vadd.f32 %v1799_v54, %v5641_v20  ;;  %v1991_v50 = vmax.f32 %v1943_v43, 0.0 }
 0x239   : > { %v5869_v62 = vadd.f32 %v4489_v13, %v5682_v46  ;;  %2110 = vrot.lane.b32.xlu1 %v1989_v8, %s4798_s21  ;;  %2112 = vrot.lane.b32.xlu0 %v1990_v12, %s4798_s21 }
 0x23a   : > { %v1803_v10 = vpop.f32.mrb[30].mxu0  ;;  %v1945_v19 = vadd.f32 %v4490_v14, %v5684_v48 }
 0x23b   : > { %v1992_v15 = vmax.f32 %v5869_v62, 0.0  ;;  %v4491_v11 = vadd.f32 %v1803_v10, %v5643_v21  ;;  %v1805_v52 = vpop.f32.mrb[31].mxu0 }
 0x23c   : > { %v4492_v20 = vadd.f32 %v1805_v52, %v5645_v22  ;;  %v1993_v43 = vmax.f32 %v1945_v19, 0.0 }
 0x23d   : > { %v5880_v18 = vadd.f32 %v4491_v11, %v5682_v46  ;;  %2114 = vrot.lane.b32.xlu1 %v1991_v50, %s4798_s21  ;;  %2116 = vrot.lane.b32.xlu0 %v1992_v15, %s4798_s21 }
 0x23e   : > { %v1809_v8 = vpop.f32.mrb[32].mxu0  ;;  %v1947_v54 = vadd.f32 %v4492_v20, %v5684_v48 }
 0x23f   : > { %v1994_v13 = vmax.f32 %v5880_v18, 0.0  ;;  %v4493_v21 = vadd.f32 %v1809_v8, %v5647_v23  ;;  %v1811_v14 = vpop.f32.mrb[33].mxu0 }
 0x240   : > { %v4494_v22 = vadd.f32 %v1811_v14, %v5649_v24  ;;  %v1995_v19 = vmax.f32 %v1947_v54, 0.0 }
 0x241   : > { %v5891_v10 = vadd.f32 %v4493_v21, %v5682_v46  ;;  %2118 = vrot.lane.b32.xlu1 %v1993_v43, %s4798_s21  ;;  %2120 = vrot.lane.b32.xlu0 %v1994_v13, %s4798_s21  ;;  %v5910_v43 = vadd.f32 %v5699_v37, %v5682_v46  ;;  %v1919_v37 = vadd.f32 %v5703_v45, %v5684_v48 }
 0x242   : > { %v1815_v50 = vpop.f32.mrb[34].mxu0  ;;  %v1949_v52 = vadd.f32 %v4494_v22, %v5684_v48 }
 0x243   : > { %v1996_v11 = vmax.f32 %v5891_v10, 0.0  ;;  %v4495_v23 = vadd.f32 %v1815_v50, %v5651_v25  ;;  %v1817_v20 = vpop.f32.mrb[35].mxu0  ;;  %v3737_v10 = vld [vmem:[%s6550_s3 + $0xa0] sm:$0xff] }
 0x244   : > { %v4496_v24 = vadd.f32 %v1817_v20, %v5653_v26  ;;  %v1997_v21 = vmax.f32 %v1949_v52, 0.0  ;;  %v1966_v52 = vmax.f32 %v5910_v43, 0.0 }
 0x245   : > { %v5902_v8 = vadd.f32 %v4495_v23, %v5682_v46  ;;  %2122 = vrot.lane.b32.xlu1 %v1995_v19, %s4798_s21  ;;  %2124 = vrot.lane.b32.xlu0 %v1996_v11, %s4798_s21 }
 0x246   : > { %v1821_v54 = vpop.f32.mrb[36].mxu0  ;;  %v1951_v14 = vadd.f32 %v4496_v24, %v5684_v48 }
 0x247   : > { %v1998_v25 = vmax.f32 %v5902_v8, 0.0  ;;  %v4497_v26 = vadd.f32 %v1821_v54, %v5655_v27  ;;  %v1823_v22 = vpop.f32.mrb[37].mxu0 }
 0x248   : > { %v4498_v50 = vadd.f32 %v1823_v22, %v5657_v28  ;;  %v1999_v23 = vmax.f32 %v1951_v14, 0.0 }
 0x249   : > { %2126 = vrot.lane.b32.xlu1 %v1997_v21, %s4798_s21  ;;  %2128 = vrot.lane.b32.xlu0 %v1998_v25, %s4798_s21  ;;  %v5924_v20 = vadd.f32 %v4497_v26, %v5682_v46  ;;  %v1967_v21 = vmax.f32 %v1919_v37, 0.0 }
 0x24a   : > { %v1827_v19 = vpop.f32.mrb[38].mxu0  ;;  %v1953_v45 = vadd.f32 %v4498_v50, %v5684_v48 }
 0x24b   : > { %v4499_v27 = vadd.f32 %v1827_v19, %v5659_v29  ;;  %v1829_v24 = vpop.f32.mrb[39].mxu0  ;;  %v2000_v14 = vmax.f32 %v5924_v20, 0.0  ;;  %v3770_v20 = vld [vmem:[%s6550_s3 + $0x128] sm:$0xff] }
 0x24c   : > { %v4500_v28 = vadd.f32 %v1829_v24, %v5661_v30  ;;  %v2001_v19 = vmax.f32 %v1953_v45, 0.0 }
 0x24d   : > { %2064 = vrot.lane.b32.xlu0 %v1966_v52, %s4798_s21  ;;  %2130 = vrot.lane.b32.xlu1 %v1999_v23, %s4798_s21  ;;  %v5935_v26 = vadd.f32 %v4499_v27, %v5682_v46 }
 0x24e   : > { %v1833_v54 = vpop.f32.mrb[40].mxu0  ;;  %v1955_v23 = vadd.f32 %v4500_v28, %v5684_v48 }
 0x24f   : > { %v4501_v29 = vadd.f32 %v1833_v54, %v5663_v31  ;;  %v1835_v22 = vpop.f32.mrb[41].mxu0  ;;  %v2002_v37 = vmax.f32 %v5935_v26, 0.0  ;;  %v3769_v26 = vld [vmem:[%s6550_s3 + $0x120] sm:$0xff] }
 0x250   : > { %v4502_v30 = vadd.f32 %v1835_v22, %v5665_v32 }
 0x251   : > { %2066 = vrot.lane.b32.xlu1 %v1967_v21, %s4798_s21  ;;  %2132 = vrot.lane.b32.xlu0 %v2000_v14, %s4798_s21  ;;  %v5946_v27 = vadd.f32 %v4501_v29, %v5682_v46  ;;  %v2003_v21 = vmax.f32 %v1955_v23, 0.0 }
 0x252   : > { %v1839_v50 = vpop.f32.mrb[42].mxu0  ;;  %v1957_v45 = vadd.f32 %v4502_v30, %v5684_v48 }
 0x253   : > { %v4503_v31 = vadd.f32 %v1839_v50, %v5667_v33  ;;  %v1841_v24 = vpop.f32.mrb[43].mxu0  ;;  %v2004_v28 = vmax.f32 %v5946_v27, 0.0 }
 0x254   : > { %v4504_v32 = vadd.f32 %v1841_v24, %v5669_v34 }
 0x255   : > { %2134 = vrot.lane.b32.xlu1 %v2001_v19, %s4798_s21  ;;  %2136 = vrot.lane.b32.xlu0 %v2002_v37, %s4798_s21  ;;  %v5957_v29 = vadd.f32 %v4503_v31, %v5682_v46  ;;  %v2005_v19 = vmax.f32 %v1957_v45, 0.0 }
 0x256   : > { %v1845_v54 = vpop.f32.mrb[44].mxu0  ;;  %v1959_v23 = vadd.f32 %v4504_v32, %v5684_v48 }
 0x257   : > { %v4505_v33 = vadd.f32 %v1845_v54, %v5671_v36  ;;  %v1847_v22 = vpop.f32.mrb[45].mxu0  ;;  %v2006_v50 = vmax.f32 %v5957_v29, 0.0 }
 0x258   : > { %v4506_v34 = vadd.f32 %v1847_v22, %v5673_v38  ;;  %v2007_v45 = vmax.f32 %v1959_v23, 0.0 }
 0x259   : > { %2138 = vrot.lane.b32.xlu1 %v2003_v21, %s4798_s21  ;;  %2140 = vrot.lane.b32.xlu0 %v2004_v28, %s4798_s21  ;;  %v5968_v31 = vadd.f32 %v4505_v33, %v5682_v46 }
 0x25a   : > { %v1851_v30 = vpop.f32.mrb[46].mxu0  ;;  %v1961_v21 = vadd.f32 %v4506_v34, %v5684_v48 }
 0x25b   : > { %v4507_v36 = vadd.f32 %v1851_v30, %v5675_v39  ;;  %v1853_v24 = vpop.f32.mrb[47].mxu0  ;;  %v2008_v54 = vmax.f32 %v5968_v31, 0.0  ;;  %v3789_v31 = vld [vmem:[%s6552_s5 + $0x40] sm:$0xff] }
 0x25c   : > { %v4508_v38 = vadd.f32 %v1853_v24, %v5677_v40  ;;  %v2009_v39 = vmax.f32 %v1961_v21, 0.0 }
 0x25d   : > { %2142 = vrot.lane.b32.xlu1 %v2005_v19, %s4798_s21  ;;  %2144 = vrot.lane.b32.xlu0 %v2006_v50, %s4798_s21  ;;  %v5979_v32 = vadd.f32 %v4507_v36, %v5682_v46 }
 0x25e   : > { %v1963_v33 = vadd.f32 %v4508_v38, %v5684_v48 }
 0x25f   : > { %v2010_v40 = vmax.f32 %v5979_v32, 0.0 }
 0x260   : > { %v2011_v22 = vmax.f32 %v1963_v33, 0.0 }
 0x261   : > { %2146 = vrot.lane.b32.xlu1 %v2007_v45, %s4798_s21  ;;  %2148 = vrot.lane.b32.xlu0 %v2008_v54, %s4798_s21 }
 0x265   : > { %2150 = vrot.lane.b32.xlu1 %v2009_v39, %s4798_s21  ;;  %2152 = vrot.lane.b32.xlu0 %v2010_v40, %s4798_s21 }
 0x269   : > { %2154 = vrot.lane.b32.xlu1 %v2011_v22, %s4798_s21  ;;  %s6566_s21 = sadd.s32 4294967295, %s4794_s20  }
 0x26a   : > { %s3813_s13 = sshll.u32 %s6566_s21, 7 }
 0x26b   : > { %s6503_s24 = scalar_lea.hbm %s6558_s11, %s3813_s13 }
 0x277   : > { %v2061_v46 = vpop.permute.xlu0 %2060 }
 0x278   : > { %v2063_v34 = vpop.permute.xlu1 %2062 }
 0x279   : > { %v5993_v19 = vsel %vm2156_vm4, %v2061_v46, %v2063_v34 }
 0x27f   : > { %v2069_v30 = vpop.permute.xlu0 %2068 }
 0x283   : > { %v2071_v23 = vpop.permute.xlu0 %2070  ;;  %v2073_v36 = vpop.permute.xlu1 %2072 }
 0x284   : > { %v2159_v48 = vsel %vm2156_vm4, %v2069_v30, %v2071_v23 }
 0x285   : > { %v2207_v21 = vmax.f32 %v1968_v58, %v2159_v48  ;;  %v2244_v58 = vld [vmem:[%s6550_s3 + $0x18] sm:$0xff] }
 0x287   : > { %v2075_v24 = vpop.permute.xlu1 %2074  ;;  %v2077_v38 = vpop.permute.xlu0 %2076 }
 0x288   : > { %v2160_v45 = vsel %vm2156_vm4, %v2073_v36, %v2075_v24 }
 0x289   : > { %v2208_v39 = vmax.f32 %v1970_v61, %v2160_v45  ;;  %v4313_v45 = vpack.c.bf16 %v2244_v58, %v2243_v41 }
 0x28b   : > { %v6001_v33 = vmax.f32 %v2207_v21, %v2208_v39  ;;  %v2079_v22 = vpop.permute.xlu1 %2078  ;;  %v2081_v46 = vpop.permute.xlu0 %2080  ;;  %v2245_v21 = vld [vmem:[%s6550_s3 + $0x20] sm:$0xff]  ;;  %v2246_v39 = vld [vmem:[%s6550_s3 + $0x28] sm:$0xff] }
 0x28c   : > { %v2161_v34 = vsel %vm2156_vm4, %v2077_v38, %v2079_v22 }
 0x28d   : > { %3981 = vmatprep.mubr.msk.f32.mxu1 %vm2260_vm5, %v6001_v33  ;;  %v2209_v57 = vmax.f32 %v1972_v49, %v2161_v34  ;;  %v2248_v34 = vld [vmem:[%s6550_s3 + $0x38] sm:$0xff] }
 0x28f   : > { %v2083_v30 = vpop.permute.xlu1 %2082  ;;  %v2085_v23 = vpop.permute.xlu0 %2084 }
 0x290   : > { %v2162_v36 = vsel %vm2156_vm4, %v2081_v46, %v2083_v30  ;;  %v2247_v46 = vld [vmem:[%s6550_s3 + $0x30] sm:$0xff] }
 0x291   : > { %v2210_v61 = vmax.f32 %v1974_v55, %v2162_v36  ;;  %v4317_v55 = vpack.c.bf16 %v2246_v39, %v2245_v21  ;;  %v4321_v58 = vpack.c.bf16 %v2248_v34, %v2247_v46 }
 0x293   : > { %v6017_v48 = vmax.f32 %v2209_v57, %v2210_v61  ;;  %v2087_v24 = vpop.permute.xlu1 %2086  ;;  %v2089_v38 = vpop.permute.xlu0 %2088 }
 0x294   : > { %v2163_v59 = vsel %vm2156_vm4, %v2085_v23, %v2087_v24 }
 0x295   : > { %3982 = vmatmul.mubr.msk.f32.vlgmr.msra.gmra.mrb[48].mxu1 %vm2260_vm5, %v6017_v48  ;;  %v2211_v30 = vmax.f32 %v1976_v63, %v2163_v59  ;;  %v2249_v63 = vld [vmem:[%s6550_s3 + $0x40] sm:$0xff] }
 0x296   : > { %4312 = vmatpush3.bf16.msra.mxu1 %v5861_v17 }
 0x297   : > { %v2091_v49 = vpop.permute.xlu1 %2090  ;;  %v2093_v51 = vpop.permute.xlu0 %2092  ;;  %4314 = vmatprep.subr.bf16.mxu1 %v4313_v45 }
 0x298   : > { %v2164_v22 = vsel %vm2156_vm4, %v2089_v38, %v2091_v49 }
 0x299   : > { %v2212_v17 = vmax.f32 %v1978_v0, %v2164_v22  ;;  %v3736_v0 = vld [vmem:[%s6550_s3 + $0x98] sm:$0xff] }
 0x29a   : > { %4316 = vmatpush3.bf16.msra.mxu1 %v4313_v45  ;;  %v4325_v49 = vpack.c.bf16 %v3736_v0, %v3735_v60 }
 0x29b   : > { %v6040_v23 = vmax.f32 %v2211_v30, %v2212_v17  ;;  %v2095_v36 = vpop.permute.xlu1 %2094  ;;  %v2097_v41 = vpop.permute.xlu0 %2096  ;;  %4318 = vmatprep.subr.bf16.mxu1 %v4317_v55 }
 0x29c   : > { %v2165_v57 = vsel %vm2156_vm4, %v2093_v51, %v2095_v36 }
 0x29d   : > { %3984 = vmatprep.mubr.msk.f32.mxu1 %vm2260_vm5, %v6040_v23  ;;  %v2213_v38 = vmax.f32 %v1980_v56, %v2165_v57 }
 0x29e   : > { %4320 = vmatpush3.bf16.msra.mxu1 %v4317_v55 }
 0x29f   : > { %v2099_v61 = vpop.permute.xlu1 %2098  ;;  %v2101_v24 = vpop.permute.xlu0 %2100  ;;  %4322 = vmatprep.subr.bf16.mxu1 %v4321_v58 }
 0x2a0   : > { %v2166_v47 = vsel %vm2156_vm4, %v2097_v41, %v2099_v61 }
 0x2a1   : > { %v2214_v45 = vmax.f32 %v1982_v42, %v2166_v47 }
 0x2a2   : > { %4324 = vmatpush3.bf16.msra.mxu1 %v4321_v58 }
 0x2a3   : > { %v6059_v21 = vmax.f32 %v2213_v38, %v2214_v45  ;;  %v2103_v39 = vpop.permute.xlu1 %2102  ;;  %v2105_v59 = vpop.permute.xlu0 %2104  ;;  %4009 = vmatprep.subr.mxu1 %v2249_v63 }
 0x2a4   : > { %v2167_v51 = vsel %vm2156_vm4, %v2101_v24, %v2103_v39 }
 0x2a5   : > { %3985 = vmatmul.mubr.msk.f32.gmra.mrb[50].mxu1 %vm2260_vm5, %v6059_v21  ;;  %v2215_v56 = vmax.f32 %v1984_v2, %v2167_v51 }
 0x2a6   : > { %4010 = vmatpush3.msra.mxu1 %v2249_v63 }
 0x2a7   : > { %v2107_v55 = vpop.permute.xlu1 %2106  ;;  %v2109_v22 = vpop.permute.xlu0 %2108  ;;  %4326 = vmatprep.subr.bf16.mxu1 %v4325_v49 }
 0x2a8   : > { %v2168_v1 = vsel %vm2156_vm4, %v2105_v59, %v2107_v55  ;;  %v2205_v59 = vmax.f32 %v1964_v44, %v5993_v19  ;;  %v3740_v44 = vld [vmem:[%s6550_s3 + $0xb8] sm:$0xff]  ;;  %v3742_v19 = vld [vmem:[%s6550_s3 + $0xc8] sm:$0xff] }
 0x2a9   : > { %v2216_v3 = vmax.f32 %v1986_v4, %v2168_v1  ;;  %v4333_v43 = vpack.c.bf16 %v3740_v44, %v3739_v16  ;;  %v3752_v55 = vld [vmem:[%s6550_s3 + $0xd8] sm:$0xff]  ;;  %v3777_v16 = vld [vmem:[%s6550_s3 + $0x160] sm:$0xff] }
 0x2ab   : > { %v6069_v42 = vmax.f32 %v2215_v56, %v2216_v3  ;;  %v2111_v46 = vpop.permute.xlu1 %2110  ;;  %v2113_v34 = vpop.permute.xlu0 %2112  ;;  %v3754_v56 = vld [vmem:[%s6550_s3 + $0xe8] sm:$0xff]  ;;  %v3755_v3 = vld [vmem:[%s6550_s3 + $0xf0] sm:$0xff] }
 0x2ac   : > { %v2169_v30 = vsel %vm2156_vm4, %v2109_v22, %v2111_v46  ;;  %v3753_v22 = vld [vmem:[%s6550_s3 + $0xe0] sm:$0xff] }
 0x2ad   : > { %3987 = vmatprep.mubr.msk.f32.mxu1 %vm2260_vm5, %v6069_v42  ;;  %v2217_v5 = vmax.f32 %v1988_v6, %v2169_v30  ;;  %v4345_v30 = vpack.c.bf16 %v3755_v3, %v3754_v56 }
 0x2af   : > { %v2115_v17 = vpop.permute.xlu1 %2114  ;;  %v2117_v36 = vpop.permute.xlu0 %2116 }
 0x2b0   : > { %v2170_v41 = vsel %vm2156_vm4, %v2113_v34, %v2115_v17  ;;  %v4341_v34 = vpack.c.bf16 %v3753_v22, %v3752_v55  ;;  %v3756_v17 = vld [vmem:[%s6550_s3 + $0xf8] sm:$0xff] }
 0x2b1   : > { %v2218_v2 = vmax.f32 %v1990_v12, %v2170_v41 }
 0x2b3   : > { %v6079_v7 = vmax.f32 %v2217_v5, %v2218_v2  ;;  %v2119_v4 = vpop.permute.xlu1 %2118  ;;  %v2121_v58 = vpop.permute.xlu0 %2120 }
 0x2b4   : > { %v2171_v57 = vsel %vm2156_vm4, %v2117_v36, %v2119_v4  ;;  %v3758_v4 = vld [vmem:[%s6550_s3 + $0x108] sm:$0xff] }
 0x2b5   : > { %3988 = vmatmul.mubr.msk.f32.gmra.mrb[52].mxu1 %vm2260_vm5, %v6079_v7  ;;  %v2219_v9 = vmax.f32 %v1992_v15, %v2171_v57 }
 0x2b7   : > { %v2123_v61 = vpop.permute.xlu1 %2122  ;;  %v2125_v24 = vpop.permute.xlu0 %2124 }
 0x2b8   : > { %v2172_v47 = vsel %vm2156_vm4, %v2121_v58, %v2123_v61  ;;  %v3759_v58 = vld [vmem:[%s6550_s3 + $0x110] sm:$0xff] }
 0x2b9   : > { %v2220_v6 = vmax.f32 %v1994_v13, %v2172_v47 }
 0x2bb   : > { %v6089_v53 = vmax.f32 %v2219_v9, %v2220_v6  ;;  %v2127_v12 = vpop.permute.xlu1 %2126  ;;  %v2129_v63 = vpop.permute.xlu0 %2128  ;;  %v3760_v6 = vld [vmem:[%s6550_s3 + $0x118] sm:$0xff] }
 0x2bc   : > { %v2173_v60 = vsel %vm2156_vm4, %v2125_v24, %v2127_v12  ;;  %v4353_v24 = vpack.c.bf16 %v3759_v58, %v3758_v4  ;;  %v3772_v12 = vld [vmem:[%s6550_s3 + $0x138] sm:$0xff] }
 0x2bd   : > { %3990 = vmatprep.mubr.msk.f32.mxu1 %vm2260_vm5, %v6089_v53  ;;  %v2221_v45 = vmax.f32 %v1996_v11, %v2173_v60  ;;  %v3738_v11 = vld [vmem:[%s6550_s3 + $0xa8] sm:$0xff]  ;;  %v4357_v60 = vpack.c.bf16 %v3770_v20, %v3769_v26 }
 0x2bf   : > { %v2131_v0 = vpop.permute.xlu1 %2130  ;;  %v2065_v15 = vpop.permute.xlu0 %2064 }
 0x2c0   : > { %v2174_v38 = vsel %vm2156_vm4, %v2129_v63, %v2131_v0 }
 0x2c1   : > { %v2222_v62 = vmax.f32 %v1998_v25, %v2174_v38  ;;  %v4329_v25 = vpack.c.bf16 %v3738_v11, %v3737_v10  ;;  %v3773_v38 = vld [vmem:[%s6550_s3 + $0x140] sm:$0xff] }
 0x2c3   : > { %v6099_v18 = vmax.f32 %v2221_v45, %v2222_v62  ;;  %v2067_v13 = vpop.permute.xlu1 %2066  ;;  %v2133_v46 = vpop.permute.xlu0 %2132 }
 0x2c4   : > { %v2158_v39 = vsel %vm2156_vm4, %v2065_v15, %v2067_v13 }
 0x2c5   : > { %v2206_v51 = vmax.f32 %v1966_v52, %v2158_v39  ;;  %3991 = vmatmul.mubr.msk.f32.gmra.mrb[54].mxu1 %vm2260_vm5, %v6099_v18  ;;  %v3741_v52 = vld [vmem:[%s6550_s3 + $0xc0] sm:$0xff]  ;;  %v3775_v39 = vld [vmem:[%s6550_s3 + $0x150] sm:$0xff] }
 0x2c7   : > { %v2229_v8 = vmax.f32 %v2205_v59, %v2206_v51  ;;  %v2135_v1 = vpop.permute.xlu1 %2134  ;;  %v2137_v41 = vpop.permute.xlu0 %2136  ;;  %v3776_v59 = vld [vmem:[%s6550_s3 + $0x158] sm:$0xff] }
 0x2c8   : > { %v2175_v57 = vsel %vm2156_vm4, %v2133_v46, %v2135_v1  ;;  %v4369_v11 = vpack.c.bf16 %v3776_v59, %v3775_v39  ;;  %v3786_v1 = vld [vmem:[%s6551_s4] ss:$0 sm:$0xff]  ;;  %v2945_v59 = vld [vmem:[%s6552_s5 + $0x28] sm:$0xff] }
 0x2c9   : > { %4011 = vmatprep.mubr.msk.f32.mxu1 %vm2260_vm5, %v2229_v8  ;;  %v2223_v47 = vmax.f32 %v2000_v14, %v2175_v57  ;;  %v2944_v39 = vld [vmem:[%s6552_s5 + $0x20] sm:$0xff] }
 0x2ca   : > { %4012 = vmatmul.mubr.msk.f32.vlgmr.msra.gmra.mrb[48].mxu1 %vm2260_vm5, %v6001_v33  ;;  %v4337_v33 = vpack.c.bf16 %v3742_v19, %v3741_v52  ;;  %v3791_v19 = vld [vmem:[%s6552_s5 + $0x50] sm:$0xff] }
 0x2cb   : > { %4328 = vmatpush3.bf16.msra.mxu1 %v4325_v49  ;;  %4014 = vmatprep.mubr.msk.f32.mxu1 %vm2260_vm5, %v6017_v48  ;;  %v3743_v49 = vld [vmem:[%s6550_s3 + $0xd0] sm:$0xff]  ;;  %v2139_v36 = vpop.permute.xlu1 %2138  ;;  %v2141_v63 = vpop.permute.xlu0 %2140 }
 0x2cc   : > { %4330 = vmatprep.subr.bf16.mxu1 %v4329_v25  ;;  %v2176_v2 = vsel %vm2156_vm4, %v2137_v41, %v2139_v36 }
 0x2cd   : > { %v2224_v61 = vmax.f32 %v2002_v37, %v2176_v2  ;;  %v3771_v37 = vld [vmem:[%s6550_s3 + $0x130] sm:$0xff] }
 0x2ce   : > { %4015 = vmatmul.mubr.msk.f32.gmra.mrb[50].mxu1 %vm2260_vm5, %v6040_v23  ;;  %v4361_v0 = vpack.c.bf16 %v3772_v12, %v3771_v37  ;;  %v2940_v12 = vld [vmem:[%s6552_s5] sm:$0xff] }
 0x2cf   : > { %4332 = vmatpush3.bf16.msra.mxu1 %v4329_v25  ;;  %4017 = vmatprep.mubr.msk.f32.mxu1 %vm2260_vm5, %v6059_v21  ;;  %v2238_v9 = vmax.f32 %v2223_v47, %v2224_v61  ;;  %v2143_v14 = vpop.permute.xlu1 %2142  ;;  %v2145_v62 = vpop.permute.xlu0 %2144 }
 0x2d0   : > { %4334 = vmatprep.subr.bf16.mxu1 %v4333_v43  ;;  %v2177_v51 = vsel %vm2156_vm4, %v2141_v63, %v2143_v14  ;;  %v2941_v63 = vld [vmem:[%s6552_s5 + $0x8] sm:$0xff] }
 0x2d1   : > { %v2225_v8 = vmax.f32 %v2004_v28, %v2177_v51 }
 0x2d2   : > { %4018 = vmatmul.mubr.msk.f32.gmra.mrb[52].mxu1 %vm2260_vm5, %v6069_v42 }
 0x2d3   : > { %4336 = vmatpush3.bf16.msra.mxu1 %v4333_v43  ;;  %4020 = vmatprep.mubr.msk.f32.mxu1 %vm2260_vm5, %v6079_v7  ;;  %v2147_v45 = vpop.permute.xlu1 %2146  ;;  %v2149_v27 = vpop.permute.xlu0 %2148 }
 0x2d4   : > { %4338 = vmatprep.subr.bf16.mxu1 %v4337_v33  ;;  %v2178_v13 = vsel %vm2156_vm4, %v2145_v62, %v2147_v45  ;;  %v2942_v62 = vld [vmem:[%s6552_s5 + $0x10] sm:$0xff] }
 0x2d5   : > { %v2226_v10 = vmax.f32 %v2006_v50, %v2178_v13 }
 0x2d6   : > { %4021 = vmatmul.mubr.msk.f32.gmra.mrb[54].mxu1 %vm2260_vm5, %v6089_v53 }
 0x2d7   : > { %4340 = vmatpush3.bf16.msra.mxu1 %v4337_v33  ;;  %4041 = vmatprep.mubr.msk.f32.mxu1 %vm2260_vm5, %v6017_v48  ;;  %v3757_v48 = vld [vmem:[%s6550_s3 + $0x100] sm:$0xff]  ;;  %v2239_v25 = vmax.f32 %v2225_v8, %v2226_v10  ;;  %v2151_v44 = vpop.permute.xlu1 %2150  ;;  %v2153_v29 = vpop.permute.xlu0 %2152  ;;  %v3792_v33 = vld [vmem:[%s6552_s5 + $0x58] sm:$0xff] }
 0x2d8   : > { %4039 = vmatprep.subr.mxu1 %v3743_v49  ;;  %v4349_v5 = vpack.c.bf16 %v3757_v48, %v3756_v17  ;;  %v2179_v43 = vsel %vm2156_vm4, %v2149_v27, %v2151_v44  ;;  %v3796_v44 = vld [vmem:[%s6552_s5 + $0x68] sm:$0xff] }
 0x2db   : > { %4040 = vmatpush3.msra.mxu1 %v3743_v49  ;;  %v2155_v28 = vpop.permute.xlu1 %2154  ;;  %v4380_v49 = vpack.c.bf16 %v3792_v33, %v3791_v19 }
 0x2dc   : > { %4042 = vmatmul.mubr.msk.f32.vlgmr.msra.gmra.mrb[48].mxu1 %vm2260_vm5, %v6040_v23  ;;  %4342 = vmatprep.subr.bf16.mxu1 %v4341_v34  ;;  %v2180_v50 = vsel %vm2156_vm4, %v2153_v29, %v2155_v28  ;;  %v3797_v29 = vld [vmem:[%s6552_s5 + $0x70] sm:$0xff] }
 0x2dd   : > { %4044 = vmatprep.mubr.msk.f32.mxu1 %vm2260_vm5, %v6059_v21  ;;  %4344 = vmatpush3.bf16.msra.mxu1 %v4341_v34 }
 0x2de   : > { %4346 = vmatprep.subr.bf16.mxu1 %v4345_v30 }
 0x2e0   : > { %4045 = vmatmul.mubr.msk.f32.gmra.mrb[50].mxu1 %vm2260_vm5, %v6069_v42 }
 0x2e1   : > { %4047 = vmatprep.mubr.msk.f32.mxu1 %vm2260_vm5, %v6079_v7  ;;  %4348 = vmatpush3.bf16.msra.mxu1 %v4345_v30 }
 0x2e2   : > { %4350 = vmatprep.subr.bf16.mxu1 %v4349_v5 }
 0x2e4   : > { %4048 = vmatmul.mubr.msk.f32.gmra.mrb[52].mxu1 %vm2260_vm5, %v6089_v53 }
 0x2e5   : > { %4050 = vmatprep.mubr.msk.f32.mxu1 %vm2260_vm5, %v6099_v18  ;;  %4352 = vmatpush3.bf16.msra.mxu1 %v4349_v5 }
 0x2e6   : > { %4354 = vmatprep.subr.bf16.mxu1 %v4353_v24 }
 0x2e8   : > { %4051 = vmatmul.mubr.msk.f32.gmra.mrb[54].mxu1 %vm2260_vm5, %v2238_v9 }
 0x2e9   : > { %4356 = vmatpush3.bf16.msra.mxu1 %v4353_v24  ;;  %4071 = vmatprep.mubr.msk.f32.mxu1 %vm2260_vm5, %v6040_v23  ;;  %v3774_v23 = vld [vmem:[%s6550_s3 + $0x148] sm:$0xff] }
 0x2ea   : > { %4069 = vmatprep.subr.mxu1 %v3760_v6  ;;  %v4365_v15 = vpack.c.bf16 %v3774_v23, %v3773_v38  ;;  %v4383_v23 = vpack.c.bf16 %v2941_v63, %v2940_v12  ;;  %v3285_v12 = vld [vmem:[%s6554_s7 + $0x58] sm:$0xff] }
 0x2ed   : > { %4070 = vmatpush3.msra.mxu1 %v3760_v6 }
 0x2ee   : > { %4072 = vmatmul.mubr.msk.f32.vlgmr.msra.gmra.mrb[48].mxu1 %vm2260_vm5, %v6059_v21  ;;  %4358 = vmatprep.subr.bf16.mxu1 %v4357_v60 }
 0x2ef   : > { %4074 = vmatprep.mubr.msk.f32.mxu1 %vm2260_vm5, %v6069_v42  ;;  %4360 = vmatpush3.bf16.msra.mxu1 %v4357_v60 }
 0x2f0   : > { %4362 = vmatprep.subr.bf16.mxu1 %v4361_v0 }
 0x2f2   : > { %4075 = vmatmul.mubr.msk.f32.gmra.mrb[50].mxu1 %vm2260_vm5, %v6079_v7 }
 0x2f3   : > { %4077 = vmatprep.mubr.msk.f32.mxu1 %vm2260_vm5, %v6089_v53  ;;  %4364 = vmatpush3.bf16.msra.mxu1 %v4361_v0 }
 0x2f4   : > { %4366 = vmatprep.subr.bf16.mxu1 %v4365_v15 }
 0x2f6   : > { %4078 = vmatmul.mubr.msk.f32.gmra.mrb[52].mxu1 %vm2260_vm5, %v6099_v18 }
 0x2f7   : > { %4080 = vmatprep.mubr.msk.f32.mxu1 %vm2260_vm5, %v2238_v9  ;;  %4368 = vmatpush3.bf16.msra.mxu1 %v4365_v15  ;;  %v2943_v15 = vld [vmem:[%s6552_s5 + $0x18] sm:$0xff] }
 0x2f8   : > { %4370 = vmatprep.subr.bf16.mxu1 %v4369_v11  ;;  %v4386_v13 = vpack.c.bf16 %v2943_v15, %v2942_v62 }
 0x2fa   : > { %4081 = vmatmul.mubr.msk.f32.gmra.mrb[54].mxu1 %vm2260_vm5, %v2239_v25 }
 0x2fb   : > { %4372 = vmatpush3.bf16.msra.mxu1 %v4369_v11  ;;  %4101 = vmatprep.mubr.msk.f32.mxu1 %vm2260_vm5, %v6059_v21  ;;  %v2228_v21 = vmax.f32 %v2010_v40, %v2180_v50  ;;  %v3790_v40 = vld [vmem:[%s6552_s5 + $0x48] sm:$0xff]  ;;  %v4389_v11 = vpack.c.bf16 %v2945_v59, %v2944_v39  ;;  %v3798_v50 = vld [vmem:[%s6552_s5 + $0x78] sm:$0xff] }
 0x2fc   : > { %4099 = vmatprep.subr.mxu1 %v3777_v16  ;;  %v4377_v52 = vpack.c.bf16 %v3790_v40, %v3789_v31  ;;  %v3802_v40 = vld [vmem:[%s6552_s5 + $0x90] sm:$0xff] }
 0x2ff   : > { %4100 = vmatpush3.msra.mxu1 %v3777_v16  ;;  %v3795_v16 = vld [vmem:[%s6552_s5 + $0x60] sm:$0xff] }
 0x300   : > { %4102 = vmatmul.mubr.msk.f32.vlgmr.msra.gmra.mrb[48].mxu1 %vm2260_vm5, %v6069_v42  ;;  %v2227_v42 = vmax.f32 %v2008_v54, %v2179_v43  ;;  %v4799_v54 = vmov 0.0|0.0   ;;  %v4392_v27 = vpack.c.bf16 %v3796_v44, %v3795_v16  ;;  %v4395_v43 = vpack.c.bf16 %v3798_v50, %v3797_v29  ;;  %v3809_v16 = vld [vmem:[%s6553_s6] ss:$0 sm:$0xff]  ;;  %v3369_v29 = vld [vmem:[%s6556_s9 + $0x8] sm:$0xff] }
 0x301   : > { %4104 = vmatprep.mubr.msk.f32.mxu1 %vm2260_vm5, %v6079_v7  ;;  %4373 = vmatprep.subr.bf16.mxu1 %v4799_v54 }
 0x302   : > { %v2240_v7 = vmax.f32 %v2227_v42, %v2228_v21  ;;  %v3799_v21 = vld [vmem:[%s6552_s5 + $0x80] sm:$0xff]  ;;  %v3800_v42 = vld [vmem:[%s6552_s5 + $0x88] sm:$0xff] }
 0x304   : > { %4105 = vmatmul.mubr.msk.f32.gmra.mrb[50].mxu1 %vm2260_vm5, %v6089_v53  ;;  %v3787_v53 = vld [vmem:[%s6552_s5 + $0x30] sm:$0xff] }
 0x305   : > { %4107 = vmatprep.mubr.msk.f32.mxu1 %vm2260_vm5, %v6099_v18  ;;  %v3788_v18 = vld [vmem:[%s6552_s5 + $0x38] sm:$0xff] }
 0x306   : > { %v4374_v32 = vpack.c.bf16 %v3788_v18, %v3787_v53  ;;  %v4398_v18 = vpack.c.bf16 %v3800_v42, %v3799_v21  ;;  %v3370_v42 = vld [vmem:[%s6556_s9 + $0x10] sm:$0xff] }
 0x308   : > { %4108 = vmatmul.mubr.msk.f32.gmra.mrb[52].mxu1 %vm2260_vm5, %v2238_v9 }
 0x309   : > { %4110 = vmatprep.mubr.msk.f32.mxu1 %vm2260_vm5, %v2239_v25  ;;  %4375 = vmatpush3.bf16.msra.mxu1 %v4374_v32 }
 0x30a   : > { %4376 = vmatprep.subr.bf16.mxu1 %v4799_v54 }
 0x30c   : > { %4111 = vmatmul.mubr.msk.f32.gmra.mrb[54].mxu1 %vm2260_vm5, %v2240_v7 }
 0x30d   : > { %4378 = vmatpush3.bf16.msra.mxu1 %v4377_v52  ;;  %4125 = vmatprep.mubr.msk.f32.mxu1 %vm4800_vm6, %v4796_v35  ;;  %v3803_v52 = vld [vmem:[%s6552_s5 + $0x98] sm:$0xff] }
 0x30e   : > { %4379 = vmatprep.subr.bf16.mxu1 %v4799_v54  ;;  %v4401_v19 = vpack.c.bf16 %v3803_v52, %v3802_v40  ;;  %v3374_v40 = vld [vmem:[%s6556_s9 + $0x30] sm:$0xff] }
 0x311   : > { %4381 = vmatpush3.bf16.msra.mxu1 %v4380_v49  ;;  %v3804_v49 = vld [vmem:[%s6552_s5 + $0xa0] sm:$0xff] }
 0x312   : > { %4382 = vmatprep.subr.bf16.mxu1 %v4799_v54 }
 0x3d3   : > { %v4103_v55 = vpop.f32.mrb[48].mxu1 }
 0x3d4   : > { %v2829_v22 = vpop.f32.mrb[49].mxu1  ;;  %v2884_v30 = vadd.f32 %v4103_v55, %v3786_v1  ;;  %v3805_v55 = vld [vmem:[%s6552_s5 + $0xa8] sm:$0xff] }
 0x3d5   : > { %v2883_v48 = vadd.f32 %v3786_v1, %v2829_v22  ;;  %v4404_v22 = vpack.c.bf16 %v3805_v55, %v3804_v49  ;;  %v3378_v55 = vld [vmem:[%s6556_s9 + $0x50] sm:$0xff] }
 0x3d6   : > { %v2892_v2 = vmax.f32 %v2884_v30, 0.0 }
 0x3d7   : > { %v4106_v56 = vpop.f32.mrb[50].mxu1  ;;  %v2891_v58 = vmax.f32 %v2883_v48, 0.0 }
 0x3d8   : > { %v2886_v3 = vadd.f32 %v4106_v56, %v3786_v1  ;;  %v2839_v46 = vpop.f32.mrb[51].mxu1  ;;  %v3807_v56 = vld [vmem:[%s6552_s5 + $0xb8] sm:$0xff] }
 0x3d9   : > { %v2885_v34 = vadd.f32 %v3786_v1, %v2839_v46 }
 0x3da   : > { %v2894_v17 = vmax.f32 %v2886_v3, 0.0 }
 0x3db   : > { %v2893_v36 = vmax.f32 %v2885_v34, 0.0  ;;  %v4109_v41 = vpop.f32.mrb[52].mxu1 }
 0x3dc   : > { %v2849_v5 = vpop.f32.mrb[53].mxu1  ;;  %2913 = vrot.lane.b32.xlu1 %v2894_v17, %s4801_s15  ;;  %v2888_v4 = vadd.f32 %v4109_v41, %v3786_v1  ;;  %v3275_v41 = vld [vmem:[%s6554_s7 + $0x8] sm:$0xff] }
 0x3dd   : > { %2911 = vrot.lane.b32.xlu0 %v2893_v36, %s4801_s15  ;;  %v2887_v57 = vadd.f32 %v3786_v1, %v2849_v5 }
 0x3de   : > { %v2896_v47 = vmax.f32 %v2888_v4, 0.0  ;;  %v3277_v4 = vld [vmem:[%s6554_s7 + $0x18] sm:$0xff] }
 0x3df   : > { %v4112_v61 = vpop.f32.mrb[54].mxu1  ;;  %v2895_v6 = vmax.f32 %v2887_v57, 0.0 }
 0x3e0   : > { %2909 = vrot.lane.b32.xlu1 %v2892_v2, %s4801_s15  ;;  %v2859_v24 = vpop.f32.mrb[55].mxu1  ;;  %v6286_v9 = vadd.f32 %v4112_v61, %v3786_v1  ;;  %v3279_v61 = vld [vmem:[%s6554_s7 + $0x28] sm:$0xff] }
 0x3e1   : > { %2907 = vrot.lane.b32.xlu0 %v2891_v58, %s4801_s15  ;;  %v6288_v26 = vadd.f32 %v3786_v1, %v2859_v24  ;;  %v3806_v1 = vld [vmem:[%s6552_s5 + $0xb0] sm:$0xff] }
 0x3e2   : > { %v2898_v20 = vmax.f32 %v6286_v9, 0.0  ;;  %v4407_v34 = vpack.c.bf16 %v3807_v56, %v3806_v1  ;;  %v3281_v9 = vld [vmem:[%s6554_s7 + $0x38] sm:$0xff]  ;;  %v3380_v56 = vld [vmem:[%s6556_s9 + $0x60] sm:$0xff] }
 0x3e3   : > { %v2897_v14 = vmax.f32 %v6288_v26, 0.0  ;;  %v3282_v26 = vld [vmem:[%s6554_s7 + $0x40] sm:$0xff] }
 0x3e4   : > { %2917 = vrot.lane.b32.xlu1 %v2896_v47, %s4801_s15 }
 0x3e5   : > { %2915 = vrot.lane.b32.xlu0 %v2895_v6, %s4801_s15 }
 0x3e8   : > { %2921 = vrot.lane.b32.xlu1 %v2898_v20, %s4801_s15 }
 0x3e9   : > { %2919 = vrot.lane.b32.xlu0 %v2897_v14, %s4801_s15  ;;  %s526_s15 = scalar_lea.vmem [#allocation3], %s3547_s29  ;;  %s4802_s29 = smov [#allocation3]  }
 0x3ea   : > { %s3477_s16 = sshll.u32 %s526_s15, 4  ;;  %s4736_s21 = sshll.u32 %s4802_s29, 4  ;;  %s6505_s16 = int_to_ptr.vmem [resolvable:$true] %s3477_s16  ;;  %s4737_s21 = int_to_ptr.vmem [resolvable:$false] %s4736_s21 }
 0x3eb   : > { %s4732_s12 = scalar_lea.vmem %s6505_s16, 128  ;;  %s4738_s0 = scalar_lea.vmem %s4737_s21, 256 }
 0x3ec   : > { %p4733_p13 = scmp.ne.s32.totalorder %s6505_s16, %s4732_s12  ;;  %p4739_p2 = scmp.lt.s32.totalorder %s6505_s16, %s4737_s21 }
 0x3ed   : > { %p4740_p3 = scmp.lt.s32.totalorder %s4738_s0, %s4732_s12 }
 0x3ee   : > { %p4734_p0 = pnand %p4733_p13, %p4901_p6 }
 0x3ef   : > { %p4741_p4 = por %p4740_p3, %p4739_p2 }
 0x3f0   : > { %p4735_p1 = pneg %p4734_p0 }
 0x3f2   : > { %p4742_p5 = pnand %p4741_p4, %p4735_p1 }
 0x44e   : > { %v2914_v37 = vpop.permute.xlu1 %2913 }
 0x44f   : > { %v2934_v60 = vmax.f32 %v2894_v17, %v2914_v37  ;;  %v2912_v0 = vpop.permute.xlu0 %2911 }
 0x450   : > { %v2933_v38 = vmax.f32 %v2893_v36, %v2912_v0  ;;  %v3274_v36 = vld [vmem:[%s6554_s7] sm:$0xff]  ;;  %v3287_v0 = vld [vmem:[%s6554_s7 + $0x68] sm:$0xff] }
 0x451   : > { %v4410_v5 = vpack.c.bf16 %v3275_v41, %v3274_v36 }
 0x452   : > { %v2946_v45 = vmax.f32 %v2933_v38, %v2934_v60  ;;  %v2910_v51 = vpop.permute.xlu1 %2909  ;;  %v3286_v60 = vld [vmem:[%s6554_s7 + $0x60] sm:$0xff] }
 0x453   : > { %v2908_v10 = vpop.permute.xlu0 %2907  ;;  %v2932_v8 = vmax.f32 %v2892_v2, %v2910_v51  ;;  %v3276_v2 = vld [vmem:[%s6554_s7 + $0x10] sm:$0xff]  ;;  %v4428_v38 = vpack.c.bf16 %v3287_v0, %v3286_v60 }
 0x454   : > { %4126 = vmatmul.mubr.msk.f32.vlgmr.msra.gmra.mrb[56].mxu1 %vm2954_vm7, %v2946_v45  ;;  %v2931_v25 = vmax.f32 %v2891_v58, %v2908_v10  ;;  %v3278_v58 = vld [vmem:[%s6554_s7 + $0x20] sm:$0xff]  ;;  %v4413_v57 = vpack.c.bf16 %v3277_v4, %v3276_v2  ;;  %v3289_v45 = vld [vmem:[%s6554_s7 + $0x78] sm:$0xff] }
 0x455   : > { %4384 = vmatpush3.bf16.msra.mxu1 %v4383_v23  ;;  %4140 = vmatprep.mubr.msk.f32.mxu1 %vm4800_vm6, %v4796_v35  ;;  %v4416_v24 = vpack.c.bf16 %v3279_v61, %v3278_v58  ;;  %v3288_v23 = vld [vmem:[%s6554_s7 + $0x70] sm:$0xff] }
 0x456   : > { %4385 = vmatprep.subr.bf16.mxu1 %v4799_v54  ;;  %v2939_v28 = vmax.f32 %v2931_v25, %v2932_v8  ;;  %v2918_v7 = vpop.permute.xlu1 %2917  ;;  %v4431_v62 = vpack.c.bf16 %v3289_v45, %v3288_v23 }
 0x457   : > { %v2916_v53 = vpop.permute.xlu0 %2915  ;;  %v2936_v31 = vmax.f32 %v2896_v47, %v2918_v7  ;;  %v3280_v47 = vld [vmem:[%s6554_s7 + $0x30] sm:$0xff]  ;;  %v3371_v7 = vld [vmem:[%s6556_s9 + $0x18] sm:$0xff] }
 0x458   : > { %v2935_v32 = vmax.f32 %v2895_v6, %v2916_v53  ;;  %v4419_v6 = vpack.c.bf16 %v3281_v9, %v3280_v47  ;;  %v4437_v53 = vpack.c.bf16 %v3371_v7, %v3370_v42 }
 0x459   : > { %4387 = vmatpush3.bf16.msra.mxu1 %v4386_v13 }
 0x45a   : > { %4388 = vmatprep.subr.bf16.mxu1 %v4799_v54  ;;  %v3101_v33 = vmax.f32 %v2935_v32, %v2936_v31  ;;  %v2922_v3 = vpop.permute.xlu1 %2921  ;;  %v3373_v31 = vld [vmem:[%s6556_s9 + $0x28] sm:$0xff] }
 0x45b   : > { %v2920_v46 = vpop.permute.xlu0 %2919  ;;  %v2938_v30 = vmax.f32 %v2898_v20, %v2922_v3  ;;  %v3283_v20 = vld [vmem:[%s6554_s7 + $0x48] sm:$0xff] }
 0x45c   : > { %v2937_v17 = vmax.f32 %v2897_v14, %v2920_v46  ;;  %v3284_v14 = vld [vmem:[%s6554_s7 + $0x50] sm:$0xff]  ;;  %v4422_v37 = vpack.c.bf16 %v3283_v20, %v3282_v26  ;;  %v3381_v3 = vld [vmem:[%s6556_s9 + $0x68] sm:$0xff] }
 0x45d   : > { %4390 = vmatpush3.bf16.msra.mxu1 %v4389_v11  ;;  %v4425_v63 = vpack.c.bf16 %v3285_v12, %v3284_v14  ;;  %v4452_v46 = vpack.c.bf16 %v3381_v3, %v3380_v56 }
 0x45e   : > { %4391 = vmatprep.subr.bf16.mxu1 %v4799_v54  ;;  %v3183_v48 = vmax.f32 %v2937_v17, %v2938_v30  ;;  %v3383_v30 = vld [vmem:[%s6556_s9 + $0x78] sm:$0xff] }
 0x460   : > { %4141 = vmatmul.mubr.msk.f32.vlgmr.msra.gmra.mrb[58].mxu1 %vm2954_vm7, %v2939_v28  ;;  %v3368_v28 = vld [vmem:[%s6556_s9] sm:$0xff] }
 0x461   : > { %4393 = vmatpush3.bf16.msra.mxu1 %v4392_v27  ;;  %4155 = vmatprep.mubr.msk.f32.mxu1 %vm4800_vm6, %v4796_v35 }
 0x462   : > { %4394 = vmatprep.subr.bf16.mxu1 %v4799_v54 }
 0x465   : > { %4396 = vmatpush3.bf16.msra.mxu1 %v4395_v43  ;;  %v4434_v43 = vpack.c.bf16 %v3369_v29, %v3368_v28 }
 0x466   : > { %4397 = vmatprep.subr.bf16.mxu1 %v4799_v54 }
 0x469   : > { %4399 = vmatpush3.bf16.msra.mxu1 %v4398_v18  ;;  %v3372_v18 = vld [vmem:[%s6556_s9 + $0x20] sm:$0xff] }
 0x46a   : > { %4400 = vmatprep.subr.bf16.mxu1 %v4799_v54  ;;  %v4440_v32 = vpack.c.bf16 %v3373_v31, %v3372_v18 }
 0x46c   : > { %4156 = vmatmul.mubr.msk.f32.vlgmr.msra.gmra.mrb[60].mxu1 %vm2954_vm7, %v3101_v33  ;;  %v3377_v33 = vld [vmem:[%s6556_s9 + $0x48] sm:$0xff] }
 0x46d   : > { %4402 = vmatpush3.bf16.msra.mxu1 %v4401_v19  ;;  %4170 = vmatprep.mubr.msk.f32.mxu1 %vm4800_vm6, %v4796_v35  ;;  %v3376_v19 = vld [vmem:[%s6556_s9 + $0x40] sm:$0xff] }
 0x46e   : > { %4403 = vmatprep.subr.bf16.mxu1 %v4799_v54  ;;  %v4446_v49 = vpack.c.bf16 %v3377_v33, %v3376_v19 }
 0x471   : > { %4405 = vmatpush3.bf16.msra.mxu1 %v4404_v22  ;;  %v3379_v22 = vld [vmem:[%s6556_s9 + $0x58] sm:$0xff] }
 0x472   : > { %4406 = vmatprep.subr.bf16.mxu1 %v4799_v54  ;;  %v4449_v1 = vpack.c.bf16 %v3379_v22, %v3378_v55 }
 0x475   : > { %4408 = vmatpush3.bf16.msra.mxu1 %v4407_v34  ;;  %v3382_v34 = vld [vmem:[%s6556_s9 + $0x70] sm:$0xff] }
 0x476   : > { %4409 = vmatprep.subr.bf16.mxu1 %v4799_v54  ;;  %v4455_v17 = vpack.c.bf16 %v3383_v30, %v3382_v34 }
 0x478   : > { %4171 = vmatmul.mubr.msk.f32.vlgmr.msra.gmra.mrb[62].mxu1 %vm2954_vm7, %v3183_v48  ;;  %v3810_v48 = vld [vmem:[%s6555_s8] ss:$0 sm:$0xff] }
 0x479   : > { %4205 = vmatprep.mubr.msk.f32.mxu1 %vm4800_vm6, %v4796_v35  ;;  %4411 = vmatpush3.bf16.msra.mxu1 %v4410_v5 }
 0x47a   : > { %4412 = vmatprep.subr.bf16.mxu1 %v4799_v54 }
 0x47d   : > { %4414 = vmatpush3.bf16.msra.mxu1 %v4413_v57 }
 0x47e   : > { %4415 = vmatprep.subr.bf16.mxu1 %v4799_v54 }
 0x481   : > { %4417 = vmatpush3.bf16.msra.mxu1 %v4416_v24 }
 0x482   : > { %4418 = vmatprep.subr.bf16.mxu1 %v4799_v54 }
 0x485   : > { %4420 = vmatpush3.bf16.msra.mxu1 %v4419_v6 }
 0x486   : > { %4421 = vmatprep.subr.bf16.mxu1 %v4799_v54 }
 0x489   : > { %4423 = vmatpush3.bf16.msra.mxu1 %v4422_v37 }
 0x48a   : > { %4424 = vmatprep.subr.bf16.mxu1 %v4799_v54 }
 0x48d   : > { %4426 = vmatpush3.bf16.msra.mxu1 %v4425_v63 }
 0x48e   : > { %4427 = vmatprep.subr.bf16.mxu1 %v4799_v54 }
 0x491   : > { %4429 = vmatpush3.bf16.msra.mxu1 %v4428_v38 }
 0x492   : > { %4430 = vmatprep.subr.bf16.mxu1 %v4799_v54 }
 0x495   : > { %4432 = vmatpush3.bf16.msra.mxu1 %v4431_v62 }
 0x496   : > { %4433 = vmatprep.subr.bf16.mxu1 %v4799_v54 }
 0x527   : > { %v3024_v15 = vpop.f32.mrb[56].mxu1 }
 0x528   : > { %v4127_v13 = vpop.f32.mrb[57].mxu1 }
 0x533   : > { %v3097_v39 = vpop.f32.mrb[58].mxu1 }
 0x534   : > { %v3098_v59 = vadd.f32 %v3097_v39, %v3024_v15  ;;  %v4142_v51 = vpop.f32.mrb[59].mxu1 }
 0x53f   : > { %v3178_v10 = vpop.f32.mrb[60].mxu1 }
 0x540   : > { %v3182_v11 = vadd.f32 %v3178_v10, %v3098_v59  ;;  %v4157_v8 = vpop.f32.mrb[61].mxu1 }
 0x54b   : > { %v3260_v25 = vpop.f32.mrb[62].mxu1 }
 0x54c   : > { %v3264_v44 = vadd.f32 %v3260_v25, %v3182_v11  ;;  %v4172_v27 = vpop.f32.mrb[63].mxu1 }
 0x54e   : > { %v3272_v50 = vadd.f32 %v3809_v16, %v3264_v44 }
 0x550   : > { %v3273_v21 = vmax.f32 %v3272_v50, 0.0 }
 0x552   : > { %4206 = vmatmul.mubr.f32.vlgmr.msra.gmra.mrb[64].mxu1 %v3273_v21 }
 0x553   : > { %4435 = vmatpush3.bf16.msra.mxu1 %v4434_v43  ;;  %4240 = vmatprep.mubr.msk.f32.mxu1 %vm4800_vm6, %v4796_v35  ;;  %v3375_v35 = vld [vmem:[%s6556_s9 + $0x38] sm:$0xff] }
 0x554   : > { %4436 = vmatprep.subr.bf16.mxu1 %v4799_v54  ;;  %v4443_v52 = vpack.c.bf16 %v3375_v35, %v3374_v40 }
 0x557   : > { %4438 = vmatpush3.bf16.msra.mxu1 %v4437_v53 }
 0x558   : > { %4439 = vmatprep.subr.bf16.mxu1 %v4799_v54 }
 0x55b   : > { %4441 = vmatpush3.bf16.msra.mxu1 %v4440_v32 }
 0x55c   : > { %4442 = vmatprep.subr.bf16.mxu1 %v4799_v54 }
 0x55f   : > { %4444 = vmatpush3.bf16.msra.mxu1 %v4443_v52 }
 0x560   : > { %4445 = vmatprep.subr.bf16.mxu1 %v4799_v54 }
 0x563   : > { %4447 = vmatpush3.bf16.msra.mxu1 %v4446_v49 }
 0x564   : > { %4448 = vmatprep.subr.bf16.mxu1 %v4799_v54 }
 0x567   : > { %4450 = vmatpush3.bf16.msra.mxu1 %v4449_v1 }
 0x568   : > { %4451 = vmatprep.subr.bf16.mxu1 %v4799_v54 }
 0x56b   : > { %4453 = vmatpush3.bf16.msra.mxu1 %v4452_v46 }
 0x56c   : > { %4454 = vmatprep.subr.bf16.mxu1 %v4799_v54  ;;  %v3811_v54 = vld [vmem:[%s6557_s10] ss:$0 sm:$0xff] }
 0x56f   : > { %4456 = vmatpush3.bf16.msra.mxu1 %v4455_v17 }
 0x625   : > { %v3363_v36 = vpop.f32.mrb[64].mxu1 }
 0x626   : > { %v3364_v41 = vadd.f32 %v3810_v48, %v3363_v36  ;;  %v4207_v5 = vpop.f32.mrb[65].mxu1 }
 0x628   : > { %v3367_v2 = vmax.f32 %v3364_v41, 0.0 }
 0x62a   : > { %4241 = vmatmul.mubr.f32.vlgmr.msra.gmra.mrb[66].mxu1 %v3367_v2 }
 0x6fd   : > { %v3457_v4 = vpop.f32.mrb[66].mxu1 }
 0x6fe   : > { %v3458_v58 = vadd.f32 %v3811_v54, %v3457_v4  ;;  %v4242_v57 = vpop.f32.mrb[67].mxu1 }
 0x700   : > { %3462 = vst.msk [vmem:[%s526_s15] sm:$0xff] %vm3461_vm8, %v3458_v58 }
 0x701   : > { %4745 = shalt.err (!%p4742_p5)
}
 0x702   : > { %s4746_s25 = scalar_lea.hbm %s6503_s24, 128  ;;  %s4750_s14 = scalar_lea.hbm %s6558_s11, 256 }
 0x703   : > { %p4747_p7 = scmp.ne.s32.totalorder %s6503_s24, %s4746_s25  ;;  %p4751_p12 = scmp.lt.u32.totalorder %s6503_s24, %s6558_s11 }
 0x704   : > { %p4752_p13 = scmp.lt.u32.totalorder %s4750_s14, %s4746_s25  ;;  %p4754_p1 = scmp.lt.u32.totalorder %s4746_s25, %s6503_s24 }
 0x705   : > { %p4748_p10 = pnand %p4747_p7, %p4901_p6 }
 0x706   : > { %p4753_p0 = por %p4752_p13, %p4751_p12 }
 0x707   : > { %p4749_p11 = pneg %p4748_p10 }
 0x708   : > { %p4755_p2 = por %p4754_p1, %p4753_p0 }
 0x70a   : > { %p4756_p3 = pnand %p4755_p2, %p4749_p11 }
 0x70c   : > { %4759 = shalt.err (!%p4756_p3)
}
 0x70d   : > { %4687 = dma.vmem_to_hbm [thread:$0]  (%p4901_p6), %s6505_s16, 128, %s6503_s24, %s3464_s30  }
 0x70e PF: > { %s3489_s0 = sand.u32 1, %s4782_s17   ;;  %p4690_p4 = pnand %p3544_p9, %p4905_p8 }
 0x70f   : > { %s3490_s12 = scalar_lea.sflag [#allocation4], %s3489_s0 }
 0x710   : > { %4777 = dma.done.wait (!%p4690_p4), %s3490_s12, 128  }
 0x711   : > { %4779 = vsyncadd (!%p4690_p4), %s3490_s12, 4294967168  ;;  %p21_p5 = scmp.ge.s32.totalorder %s4886_s23, 4   ;;  %s6567_s17 = smov %s4786_s18 }
 0x712   : > { %s6568_s18 = smov %s4790_s19  ;;  %s6569_s19 = smov %s4899_s26 }
 0x713   : > { %s6570_s20 = smov %s4886_s23  ;;  %23 = sbr.rel (!%p21_p5) target bundleno = 5 (0x5), region = 153 }
 0x71a   :  { %3495 = vsyncpa [#allocation4], 1 }
 0x71b   :  { %3497 = vsyncpa [#allocation4 + $0x1], 1 }

</bundles_post_ra>
